<compile_context>
chip_gen: v6e
topology: v6e:2x2x1
jax: 0.10.0
libtpu: 0.0.40
codegen_flags: <defaults>
</compile_context>

<pallas_src>
import functools
import math

import jax
import jax.numpy as jnp
from jax.experimental import pallas as pl
from jax.experimental.pallas import tpu as pltpu


def mha_kernel(q_ref, k_ref, v_ref, mask_ref,
               wq_ref, bq_ref, wk_ref, bk_ref, wv_ref, bv_ref,
               wo_ref, bo_ref, gamma_ref, beta_ref,
               o_ref, *, num_heads):
    tq, E = q_ref.shape[1], q_ref.shape[2]
    hd = E // num_heads
    scale = 1.0 / math.sqrt(hd)

    qb = q_ref[0]                                     # (tq, E) f32 (also residual)
    kb = k_ref[0]                                     # (Sk, E)
    vb = v_ref[0]                                     # (Sk, E)
    masked = mask_ref[0].astype(jnp.int32) != 0       # (tq, Sk) bool

    # Fused (all heads at once) projections: x @ W^T + b on the MXU, f32 accum.
    Q = jnp.dot(qb, wq_ref[...], preferred_element_type=jnp.float32) + bq_ref[...]
    K = jnp.dot(kb, wk_ref[...], preferred_element_type=jnp.float32) + bk_ref[...]
    V = jnp.dot(vb, wv_ref[...], preferred_element_type=jnp.float32) + bv_ref[...]

    # bf16 inputs for the attention matmuls (v6e/v7x MXU-native), f32 accumulation.
    Qb = Q.astype(jnp.bfloat16)
    Kb = K.astype(jnp.bfloat16)
    Vb = V.astype(jnp.bfloat16)
    Wo = wo_ref[...]                                  # (E, E) f32

    out_lin = jnp.zeros((tq, E), jnp.float32)
    for h in range(num_heads):                        # static loop, nh is small
        lo, hi = h * hd, (h + 1) * hd
        # scores: contract head dim of Q against head dim of K (no explicit K.T)
        s = jax.lax.dot_general(
            Qb[:, lo:hi], Kb[:, lo:hi],
            dimension_numbers=(((1,), (1,)), ((), ())),
            preferred_element_type=jnp.float32) * scale       # (tq, Sk)
        # masked_fill_(mask, -inf)  -> finite fill to avoid NaN on fully-masked rows
        s = jnp.where(masked, -1e30, s)
        # numerically-stable softmax over keys
        m = jnp.max(s, axis=-1, keepdims=True)
        p = jnp.exp(s - m)
        denom = jnp.sum(p, axis=-1, keepdims=True)
        attn = p * pl.reciprocal(denom, approx=True)
        # attention-weighted values for this head
        oh = jnp.dot(attn.astype(jnp.bfloat16), Vb[:, lo:hi],
                     preferred_element_type=jnp.float32)       # (tq, hd)
        # fused "concat heads then output Linear": A @ Wo == sum_h A_h @ Wo[rows_h]
        out_lin = out_lin + jnp.dot(oh, Wo[lo:hi, :],
                                    preferred_element_type=jnp.float32)
    out_lin = out_lin + bo_ref[...]

    # residual + LayerNorm (eps matches torch default 1e-5)
    x = qb + out_lin
    mu = jnp.mean(x, axis=-1, keepdims=True)
    xc = x - mu
    var = jnp.mean(xc * xc, axis=-1, keepdims=True)
    inv = jax.lax.rsqrt(var + 1e-5)
    o_ref[0] = xc * inv * gamma_ref[...] + beta_ref[...]


def _pick_q_tile(sq):
    # Prefer large multiple-of-32 tiles (int8 mask sublane packing + lane density);
    # for small sequences fall back to the full sequence (full-dim blocks are legal).
    for cand in (512, 256, 128, 64, 32):
        if sq % cand == 0:
            return cand
    return sq


def multi_head_attention(key, value, query, mask,
                         wq, bq, wk, bk, wv, bv, wo, bo, gamma, beta,
                         *, num_heads):
    """key/value/query: (B,S,E) f32; mask: (B,Sq,Sk) int8 (nonzero=masked);
    wq/wk/wv/wo: (E,E) pre-transposed stacked weights; b*/gamma/beta: (1,E)."""
    B, Sq, E = query.shape
    Sk = key.shape[1]
    assert E % num_heads == 0

    tq = _pick_q_tile(Sq)
    n_qt = Sq // tq

    kernel = functools.partial(mha_kernel, num_heads=num_heads)

    q_spec = pl.BlockSpec((1, tq, E), lambda b, t: (b, t, 0))
    kv_spec = pl.BlockSpec((1, Sk, E), lambda b, t: (b, 0, 0))
    mask_spec = pl.BlockSpec((1, tq, Sk), lambda b, t: (b, t, 0))
    w_spec = lambda: pl.BlockSpec((E, E), lambda b, t: (0, 0))
    b_spec = lambda: pl.BlockSpec((1, E), lambda b, t: (0, 0))

    return pl.pallas_call(
        kernel,
        out_shape=jax.ShapeDtypeStruct((B, Sq, E), jnp.float32),
        grid_spec=pltpu.PrefetchScalarGridSpec(
            num_scalar_prefetch=0,
            grid=(B, n_qt),
            in_specs=[
                q_spec,                 # query tile
                kv_spec,                # key   (full sequence per step)
                kv_spec,                # value (full sequence per step)
                mask_spec,              # mask tile (int8)
                w_spec(), b_spec(),     # Wq^T (stacked heads), bq
                w_spec(), b_spec(),     # Wk^T, bk
                w_spec(), b_spec(),     # Wv^T, bv
                w_spec(), b_spec(),     # Wo^T, bo
                b_spec(), b_spec(),     # LayerNorm gamma, beta
            ],
            out_specs=q_spec,
        ),
        compiler_params=pltpu.CompilerParams(
            dimension_semantics=("parallel", "parallel"),
            vmem_limit_bytes=48 * 1024 * 1024),   # < v7x 64 MiB physical VMEM
    )(query, key, value, mask, wq, bq, wk, bk, wv, bv, wo, bo, gamma, beta)


def reference(key, value, query, mask,
              wq, bq, wk, bk, wv, bv, wo, bo, gamma, beta, num_heads):
    """Pure-JAX f32 reference mirroring the PyTorch module (eval mode)."""
    E = query.shape[-1]
    hd = E // num_heads
    Q = query @ wq + bq
    K = key @ wk + bk
    V = value @ wv + bv
    heads = []
    for h in range(num_heads):
        lo, hi = h * hd, (h + 1) * hd
        s = jnp.einsum("bqd,bkd->bqk", Q[..., lo:hi], K[..., lo:hi]) / math.sqrt(hd)
        s = jnp.where(mask != 0, -1e30, s)
        p = jax.nn.softmax(s, axis=-1)
        heads.append(jnp.einsum("bqk,bkd->bqd", p, V[..., lo:hi]))
    attention = jnp.concatenate(heads, axis=-1)
    x = query + (attention @ wo + bo)
    mu = jnp.mean(x, axis=-1, keepdims=True)
    var = jnp.mean((x - mu) ** 2, axis=-1, keepdims=True)
    return (x - mu) / jnp.sqrt(var + 1e-5) * gamma + beta


if __name__ == "__main__":
    B, S, E, NH = 2, 8, 128, 4     # embedding_dim=128, num_heads=4 -> head_dim=32

    root = jax.random.PRNGKey(0)
    keys = jax.random.split(root, 13)

    query = jax.random.normal(keys[0], (B, S, E), dtype=jnp.float32)
    key_in = jax.random.normal(keys[1], (B, S, E), dtype=jnp.float32)
    value_in = jax.random.normal(keys[2], (B, S, E), dtype=jnp.float32)

    # Causal-style mask (strict upper triangle masked); nonzero == masked. int8.
    causal = (jnp.arange(S)[None, :] > jnp.arange(S)[:, None])
    mask = jnp.broadcast_to(causal[None], (B, S, S)).astype(jnp.int8)

    # nn.Linear-style params.  Per-head Wq_i/Wk_i/Wv_i (head_dim, E) are stacked
    # across heads and passed transposed as (E, E); biases stacked as (1, E).
    lim = 1.0 / math.sqrt(E)
    u = lambda k, shape: jax.random.uniform(k, shape, jnp.float32, -lim, lim)
    wq, bq = u(keys[3], (E, E)), u(keys[4], (1, E))
    wk, bk = u(keys[5], (E, E)), u(keys[6], (1, E))
    wv, bv = u(keys[7], (E, E)), u(keys[8], (1, E))
    wo, bo = u(keys[9], (E, E)), u(keys[10], (1, E))
    gamma = 1.0 + 0.1 * jax.random.normal(keys[11], (1, E), dtype=jnp.float32)
    beta = 0.1 * jax.random.normal(keys[12], (1, E), dtype=jnp.float32)

    out = multi_head_attention(key_in, value_in, query, mask,
                               wq, bq, wk, bk, wv, bv, wo, bo, gamma, beta,
                               num_heads=NH)
    out = jax.block_until_ready(out)

    ref = reference(key_in, value_in, query, mask,
                    wq, bq, wk, bk, wv, bv, wo, bo, gamma, beta, NH)
    assert out.shape == (B, S, E)
    max_err = float(jnp.max(jnp.abs(out - ref)))
    # bf16 attention matmuls + approx reciprocal -> loosened (but tight) tolerance
    assert jnp.allclose(out, ref, atol=2e-2, rtol=2e-2), f"mismatch vs reference (max abs err {max_err})"

    print("KERNEL_OK")
</pallas_src>

<mosaic_0001>
module attributes {stable_mosaic.version = 11 : i64} {
  func.func @mha_kernel(%arg0: i32, %arg1: i32, %arg2: memref<1x8x128xf32, #tpu.memory_space<vmem>>, %arg3: memref<1x8x128xf32, #tpu.memory_space<vmem>>, %arg4: memref<1x8x128xf32, #tpu.memory_space<vmem>>, %arg5: memref<1x8x8xi8, #tpu.memory_space<vmem>>, %arg6: memref<128x128xf32, #tpu.memory_space<vmem>>, %arg7: memref<1x128xf32, #tpu.memory_space<vmem>>, %arg8: memref<128x128xf32, #tpu.memory_space<vmem>>, %arg9: memref<1x128xf32, #tpu.memory_space<vmem>>, %arg10: memref<128x128xf32, #tpu.memory_space<vmem>>, %arg11: memref<1x128xf32, #tpu.memory_space<vmem>>, %arg12: memref<128x128xf32, #tpu.memory_space<vmem>>, %arg13: memref<1x128xf32, #tpu.memory_space<vmem>>, %arg14: memref<1x128xf32, #tpu.memory_space<vmem>>, %arg15: memref<1x128xf32, #tpu.memory_space<vmem>>, %arg16: memref<1x8x128xf32, #tpu.memory_space<vmem>>) attributes {dimension_semantics = [#tpu.dimension_semantics<parallel>, #tpu.dimension_semantics<parallel>], iteration_bounds = array<i64: 2, 1>, scalar_prefetch = 0 : i64, scratch_operands = 0 : i64, tpu.core_type = #tpu.core_type<tc>, window_params = [{transform_indices = @transform_0, window_bounds = array<i64: 1, 8, 128>}, {transform_indices = @transform_1, window_bounds = array<i64: 1, 8, 128>}, {transform_indices = @transform_2, window_bounds = array<i64: 1, 8, 128>}, {transform_indices = @transform_3, window_bounds = array<i64: 1, 8, 8>}, {pipeline_mode = #tpu.pipeline_mode<synchronous>, transform_indices = @transform_4, window_bounds = array<i64: 128, 128>}, {pipeline_mode = #tpu.pipeline_mode<synchronous>, transform_indices = @transform_5, window_bounds = array<i64: 1, 128>}, {pipeline_mode = #tpu.pipeline_mode<synchronous>, transform_indices = @transform_6, window_bounds = array<i64: 128, 128>}, {pipeline_mode = #tpu.pipeline_mode<synchronous>, transform_indices = @transform_7, window_bounds = array<i64: 1, 128>}, {pipeline_mode = #tpu.pipeline_mode<synchronous>, transform_indices = @transform_8, window_bounds = array<i64: 128, 128>}, {pipeline_mode = #tpu.pipeline_mode<synchronous>, transform_indices = @transform_9, window_bounds = array<i64: 1, 128>}, {pipeline_mode = #tpu.pipeline_mode<synchronous>, transform_indices = @transform_10, window_bounds = array<i64: 128, 128>}, {pipeline_mode = #tpu.pipeline_mode<synchronous>, transform_indices = @transform_11, window_bounds = array<i64: 1, 128>}, {pipeline_mode = #tpu.pipeline_mode<synchronous>, transform_indices = @transform_12, window_bounds = array<i64: 1, 128>}, {pipeline_mode = #tpu.pipeline_mode<synchronous>, transform_indices = @transform_13, window_bounds = array<i64: 1, 128>}, {transform_indices = @transform_14, window_bounds = array<i64: 1, 8, 128>}]} {
    %c0 = arith.constant 0 : index
    %c0_0 = arith.constant 0 : index
    %c0_1 = arith.constant 0 : index
    %0 = vector.load %arg2[%c0, %c0_0, %c0_1] : memref<1x8x128xf32, #tpu.memory_space<vmem>>, vector<1x8x128xf32>
    %1 = vector.shape_cast %0 : vector<1x8x128xf32> to vector<8x128xf32>
    %c0_2 = arith.constant 0 : index
    %c0_3 = arith.constant 0 : index
    %c0_4 = arith.constant 0 : index
    %2 = vector.load %arg3[%c0_2, %c0_3, %c0_4] : memref<1x8x128xf32, #tpu.memory_space<vmem>>, vector<1x8x128xf32>
    %3 = vector.shape_cast %2 : vector<1x8x128xf32> to vector<8x128xf32>
    %c0_5 = arith.constant 0 : index
    %c0_6 = arith.constant 0 : index
    %c0_7 = arith.constant 0 : index
    %4 = vector.load %arg4[%c0_5, %c0_6, %c0_7] : memref<1x8x128xf32, #tpu.memory_space<vmem>>, vector<1x8x128xf32>
    %5 = vector.shape_cast %4 : vector<1x8x128xf32> to vector<8x128xf32>
    %c0_8 = arith.constant 0 : index
    %c0_9 = arith.constant 0 : index
    %c0_10 = arith.constant 0 : index
    %6 = vector.load %arg5[%c0_8, %c0_9, %c0_10] : memref<1x8x8xi8, #tpu.memory_space<vmem>>, vector<1x8x8xi8>
    %7 = vector.shape_cast %6 : vector<1x8x8xi8> to vector<8x8xi8>
    %8 = arith.extsi %7 : vector<8x8xi8> to vector<8x8xi32>
    %c0_i32 = arith.constant 0 : i32
    %9 = vector.broadcast %c0_i32 : i32 to vector<8x8xi32>
    %10 = arith.cmpi ne, %8, %9 : vector<8x8xi32>
    %c0_11 = arith.constant 0 : index
    %c0_12 = arith.constant 0 : index
    %11 = vector.load %arg6[%c0_11, %c0_12] : memref<128x128xf32, #tpu.memory_space<vmem>>, vector<128x128xf32>
    %cst = arith.constant dense<0.000000e+00> : vector<8x128xf32>
    %12 = tpu.matmul %1, %11, %cst {dimension_numbers = #tpu.dot_dimension_numbers<[1], [0], [0], [1], [0, 0, 1, 1], [], []>} : vector<8x128xf32>, vector<128x128xf32>, vector<8x128xf32> -> vector<8x128xf32>
    %c0_13 = arith.constant 0 : index
    %c0_14 = arith.constant 0 : index
    %13 = vector.load %arg7[%c0_13, %c0_14] : memref<1x128xf32, #tpu.memory_space<vmem>>, vector<1x128xf32>
    %14 = vector.broadcast %13 : vector<1x128xf32> to vector<8x128xf32>
    %15 = arith.addf %12, %14 : vector<8x128xf32>
    %c0_15 = arith.constant 0 : index
    %c0_16 = arith.constant 0 : index
    %16 = vector.load %arg8[%c0_15, %c0_16] : memref<128x128xf32, #tpu.memory_space<vmem>>, vector<128x128xf32>
    %cst_17 = arith.constant dense<0.000000e+00> : vector<8x128xf32>
    %17 = tpu.matmul %3, %16, %cst_17 {dimension_numbers = #tpu.dot_dimension_numbers<[1], [0], [0], [1], [0, 0, 1, 1], [], []>} : vector<8x128xf32>, vector<128x128xf32>, vector<8x128xf32> -> vector<8x128xf32>
    %c0_18 = arith.constant 0 : index
    %c0_19 = arith.constant 0 : index
    %18 = vector.load %arg9[%c0_18, %c0_19] : memref<1x128xf32, #tpu.memory_space<vmem>>, vector<1x128xf32>
    %19 = vector.broadcast %18 : vector<1x128xf32> to vector<8x128xf32>
    %20 = arith.addf %17, %19 : vector<8x128xf32>
    %c0_20 = arith.constant 0 : index
    %c0_21 = arith.constant 0 : index
    %21 = vector.load %arg10[%c0_20, %c0_21] : memref<128x128xf32, #tpu.memory_space<vmem>>, vector<128x128xf32>
    %cst_22 = arith.constant dense<0.000000e+00> : vector<8x128xf32>
    %22 = tpu.matmul %5, %21, %cst_22 {dimension_numbers = #tpu.dot_dimension_numbers<[1], [0], [0], [1], [0, 0, 1, 1], [], []>} : vector<8x128xf32>, vector<128x128xf32>, vector<8x128xf32> -> vector<8x128xf32>
    %c0_23 = arith.constant 0 : index
    %c0_24 = arith.constant 0 : index
    %23 = vector.load %arg11[%c0_23, %c0_24] : memref<1x128xf32, #tpu.memory_space<vmem>>, vector<1x128xf32>
    %24 = vector.broadcast %23 : vector<1x128xf32> to vector<8x128xf32>
    %25 = arith.addf %22, %24 : vector<8x128xf32>
    %26 = arith.truncf %15 : vector<8x128xf32> to vector<8x128xbf16>
    %27 = arith.truncf %20 : vector<8x128xf32> to vector<8x128xbf16>
    %28 = arith.truncf %25 : vector<8x128xf32> to vector<8x128xbf16>
    %c0_25 = arith.constant 0 : index
    %c0_26 = arith.constant 0 : index
    %29 = vector.load %arg12[%c0_25, %c0_26] : memref<128x128xf32, #tpu.memory_space<vmem>>, vector<128x128xf32>
    %cst_27 = arith.constant 0.000000e+00 : f32
    %30 = vector.broadcast %cst_27 : f32 to vector<8x128xf32>
    %31 = vector.extract_strided_slice %26 {offsets = [0, 0], sizes = [8, 32], strides = [1, 1]} : vector<8x128xbf16> to vector<8x32xbf16>
    %32 = vector.extract_strided_slice %27 {offsets = [0, 0], sizes = [8, 32], strides = [1, 1]} : vector<8x128xbf16> to vector<8x32xbf16>
    %cst_28 = arith.constant dense<0.000000e+00> : vector<8x8xf32>
    %33 = tpu.matmul %31, %32, %cst_28 {dimension_numbers = #tpu.dot_dimension_numbers<[1], [1], [0], [0], [0, 0, 1, 0], [], []>} : vector<8x32xbf16>, vector<8x32xbf16>, vector<8x8xf32> -> vector<8x8xf32>
    %cst_29 = arith.constant 0.176776692 : f32
    %34 = vector.broadcast %cst_29 : f32 to vector<8x8xf32>
    %35 = arith.mulf %33, %34 : vector<8x8xf32>
    %cst_30 = arith.constant -1.000000e+30 : f32
    %36 = vector.broadcast %cst_30 : f32 to vector<8x8xf32>
    %37 = arith.select %10, %36, %35 : vector<8x8xi1>, vector<8x8xf32>
    %cst_31 = arith.constant dense<0xFF800000> : vector<8xf32>
    %38 = vector.multi_reduction <maximumf>, %37, %cst_31 [1] : vector<8x8xf32> to vector<8xf32>
    %39 = vector.shape_cast %38 : vector<8xf32> to vector<8x1xf32>
    %40 = vector.broadcast %39 : vector<8x1xf32> to vector<8x8xf32>
    %41 = arith.subf %37, %40 : vector<8x8xf32>
    %42 = math.exp %41 : vector<8x8xf32>
    %cst_32 = arith.constant dense<0.000000e+00> : vector<8xf32>
    %43 = vector.multi_reduction <add>, %42, %cst_32 [1] : vector<8x8xf32> to vector<8xf32>
    %44 = vector.shape_cast %43 : vector<8xf32> to vector<8x1xf32>
    %45 = tpu.reciprocal %44 {approx = true} : vector<8x1xf32> -> vector<8x1xf32>
    %46 = vector.broadcast %45 : vector<8x1xf32> to vector<8x8xf32>
    %47 = arith.mulf %42, %46 : vector<8x8xf32>
    %48 = arith.truncf %47 : vector<8x8xf32> to vector<8x8xbf16>
    %49 = vector.extract_strided_slice %28 {offsets = [0, 0], sizes = [8, 32], strides = [1, 1]} : vector<8x128xbf16> to vector<8x32xbf16>
    %cst_33 = arith.constant dense<0.000000e+00> : vector<8x32xf32>
    %50 = tpu.matmul %48, %49, %cst_33 {dimension_numbers = #tpu.dot_dimension_numbers<[1], [0], [0], [1], [0, 0, 1, 1], [], []>} : vector<8x8xbf16>, vector<8x32xbf16>, vector<8x32xf32> -> vector<8x32xf32>
    %51 = vector.extract_strided_slice %29 {offsets = [0, 0], sizes = [32, 128], strides = [1, 1]} : vector<128x128xf32> to vector<32x128xf32>
    %cst_34 = arith.constant dense<0.000000e+00> : vector<8x128xf32>
    %52 = tpu.matmul %50, %51, %cst_34 {dimension_numbers = #tpu.dot_dimension_numbers<[1], [0], [0], [1], [0, 0, 1, 1], [], []>} : vector<8x32xf32>, vector<32x128xf32>, vector<8x128xf32> -> vector<8x128xf32>
    %53 = arith.addf %30, %52 : vector<8x128xf32>
    %54 = vector.extract_strided_slice %26 {offsets = [0, 32], sizes = [8, 32], strides = [1, 1]} : vector<8x128xbf16> to vector<8x32xbf16>
    %55 = vector.extract_strided_slice %27 {offsets = [0, 32], sizes = [8, 32], strides = [1, 1]} : vector<8x128xbf16> to vector<8x32xbf16>
    %cst_35 = arith.constant dense<0.000000e+00> : vector<8x8xf32>
    %56 = tpu.matmul %54, %55, %cst_35 {dimension_numbers = #tpu.dot_dimension_numbers<[1], [1], [0], [0], [0, 0, 1, 0], [], []>} : vector<8x32xbf16>, vector<8x32xbf16>, vector<8x8xf32> -> vector<8x8xf32>
    %cst_36 = arith.constant 0.176776692 : f32
    %57 = vector.broadcast %cst_36 : f32 to vector<8x8xf32>
    %58 = arith.mulf %56, %57 : vector<8x8xf32>
    %cst_37 = arith.constant -1.000000e+30 : f32
    %59 = vector.broadcast %cst_37 : f32 to vector<8x8xf32>
    %60 = arith.select %10, %59, %58 : vector<8x8xi1>, vector<8x8xf32>
    %cst_38 = arith.constant dense<0xFF800000> : vector<8xf32>
    %61 = vector.multi_reduction <maximumf>, %60, %cst_38 [1] : vector<8x8xf32> to vector<8xf32>
    %62 = vector.shape_cast %61 : vector<8xf32> to vector<8x1xf32>
    %63 = vector.broadcast %62 : vector<8x1xf32> to vector<8x8xf32>
    %64 = arith.subf %60, %63 : vector<8x8xf32>
    %65 = math.exp %64 : vector<8x8xf32>
    %cst_39 = arith.constant dense<0.000000e+00> : vector<8xf32>
    %66 = vector.multi_reduction <add>, %65, %cst_39 [1] : vector<8x8xf32> to vector<8xf32>
    %67 = vector.shape_cast %66 : vector<8xf32> to vector<8x1xf32>
    %68 = tpu.reciprocal %67 {approx = true} : vector<8x1xf32> -> vector<8x1xf32>
    %69 = vector.broadcast %68 : vector<8x1xf32> to vector<8x8xf32>
    %70 = arith.mulf %65, %69 : vector<8x8xf32>
    %71 = arith.truncf %70 : vector<8x8xf32> to vector<8x8xbf16>
    %72 = vector.extract_strided_slice %28 {offsets = [0, 32], sizes = [8, 32], strides = [1, 1]} : vector<8x128xbf16> to vector<8x32xbf16>
    %cst_40 = arith.constant dense<0.000000e+00> : vector<8x32xf32>
    %73 = tpu.matmul %71, %72, %cst_40 {dimension_numbers = #tpu.dot_dimension_numbers<[1], [0], [0], [1], [0, 0, 1, 1], [], []>} : vector<8x8xbf16>, vector<8x32xbf16>, vector<8x32xf32> -> vector<8x32xf32>
    %74 = vector.extract_strided_slice %29 {offsets = [32, 0], sizes = [32, 128], strides = [1, 1]} : vector<128x128xf32> to vector<32x128xf32>
    %cst_41 = arith.constant dense<0.000000e+00> : vector<8x128xf32>
    %75 = tpu.matmul %73, %74, %cst_41 {dimension_numbers = #tpu.dot_dimension_numbers<[1], [0], [0], [1], [0, 0, 1, 1], [], []>} : vector<8x32xf32>, vector<32x128xf32>, vector<8x128xf32> -> vector<8x128xf32>
    %76 = arith.addf %53, %75 : vector<8x128xf32>
    %77 = vector.extract_strided_slice %26 {offsets = [0, 64], sizes = [8, 32], strides = [1, 1]} : vector<8x128xbf16> to vector<8x32xbf16>
    %78 = vector.extract_strided_slice %27 {offsets = [0, 64], sizes = [8, 32], strides = [1, 1]} : vector<8x128xbf16> to vector<8x32xbf16>
    %cst_42 = arith.constant dense<0.000000e+00> : vector<8x8xf32>
    %79 = tpu.matmul %77, %78, %cst_42 {dimension_numbers = #tpu.dot_dimension_numbers<[1], [1], [0], [0], [0, 0, 1, 0], [], []>} : vector<8x32xbf16>, vector<8x32xbf16>, vector<8x8xf32> -> vector<8x8xf32>
    %cst_43 = arith.constant 0.176776692 : f32
    %80 = vector.broadcast %cst_43 : f32 to vector<8x8xf32>
    %81 = arith.mulf %79, %80 : vector<8x8xf32>
    %cst_44 = arith.constant -1.000000e+30 : f32
    %82 = vector.broadcast %cst_44 : f32 to vector<8x8xf32>
    %83 = arith.select %10, %82, %81 : vector<8x8xi1>, vector<8x8xf32>
    %cst_45 = arith.constant dense<0xFF800000> : vector<8xf32>
    %84 = vector.multi_reduction <maximumf>, %83, %cst_45 [1] : vector<8x8xf32> to vector<8xf32>
    %85 = vector.shape_cast %84 : vector<8xf32> to vector<8x1xf32>
    %86 = vector.broadcast %85 : vector<8x1xf32> to vector<8x8xf32>
    %87 = arith.subf %83, %86 : vector<8x8xf32>
    %88 = math.exp %87 : vector<8x8xf32>
    %cst_46 = arith.constant dense<0.000000e+00> : vector<8xf32>
    %89 = vector.multi_reduction <add>, %88, %cst_46 [1] : vector<8x8xf32> to vector<8xf32>
    %90 = vector.shape_cast %89 : vector<8xf32> to vector<8x1xf32>
    %91 = tpu.reciprocal %90 {approx = true} : vector<8x1xf32> -> vector<8x1xf32>
    %92 = vector.broadcast %91 : vector<8x1xf32> to vector<8x8xf32>
    %93 = arith.mulf %88, %92 : vector<8x8xf32>
    %94 = arith.truncf %93 : vector<8x8xf32> to vector<8x8xbf16>
    %95 = vector.extract_strided_slice %28 {offsets = [0, 64], sizes = [8, 32], strides = [1, 1]} : vector<8x128xbf16> to vector<8x32xbf16>
    %cst_47 = arith.constant dense<0.000000e+00> : vector<8x32xf32>
    %96 = tpu.matmul %94, %95, %cst_47 {dimension_numbers = #tpu.dot_dimension_numbers<[1], [0], [0], [1], [0, 0, 1, 1], [], []>} : vector<8x8xbf16>, vector<8x32xbf16>, vector<8x32xf32> -> vector<8x32xf32>
    %97 = vector.extract_strided_slice %29 {offsets = [64, 0], sizes = [32, 128], strides = [1, 1]} : vector<128x128xf32> to vector<32x128xf32>
    %cst_48 = arith.constant dense<0.000000e+00> : vector<8x128xf32>
    %98 = tpu.matmul %96, %97, %cst_48 {dimension_numbers = #tpu.dot_dimension_numbers<[1], [0], [0], [1], [0, 0, 1, 1], [], []>} : vector<8x32xf32>, vector<32x128xf32>, vector<8x128xf32> -> vector<8x128xf32>
    %99 = arith.addf %76, %98 : vector<8x128xf32>
    %100 = vector.extract_strided_slice %26 {offsets = [0, 96], sizes = [8, 32], strides = [1, 1]} : vector<8x128xbf16> to vector<8x32xbf16>
    %101 = vector.extract_strided_slice %27 {offsets = [0, 96], sizes = [8, 32], strides = [1, 1]} : vector<8x128xbf16> to vector<8x32xbf16>
    %cst_49 = arith.constant dense<0.000000e+00> : vector<8x8xf32>
    %102 = tpu.matmul %100, %101, %cst_49 {dimension_numbers = #tpu.dot_dimension_numbers<[1], [1], [0], [0], [0, 0, 1, 0], [], []>} : vector<8x32xbf16>, vector<8x32xbf16>, vector<8x8xf32> -> vector<8x8xf32>
    %cst_50 = arith.constant 0.176776692 : f32
    %103 = vector.broadcast %cst_50 : f32 to vector<8x8xf32>
    %104 = arith.mulf %102, %103 : vector<8x8xf32>
    %cst_51 = arith.constant -1.000000e+30 : f32
    %105 = vector.broadcast %cst_51 : f32 to vector<8x8xf32>
    %106 = arith.select %10, %105, %104 : vector<8x8xi1>, vector<8x8xf32>
    %cst_52 = arith.constant dense<0xFF800000> : vector<8xf32>
    %107 = vector.multi_reduction <maximumf>, %106, %cst_52 [1] : vector<8x8xf32> to vector<8xf32>
    %108 = vector.shape_cast %107 : vector<8xf32> to vector<8x1xf32>
    %109 = vector.broadcast %108 : vector<8x1xf32> to vector<8x8xf32>
    %110 = arith.subf %106, %109 : vector<8x8xf32>
    %111 = math.exp %110 : vector<8x8xf32>
    %cst_53 = arith.constant dense<0.000000e+00> : vector<8xf32>
    %112 = vector.multi_reduction <add>, %111, %cst_53 [1] : vector<8x8xf32> to vector<8xf32>
    %113 = vector.shape_cast %112 : vector<8xf32> to vector<8x1xf32>
    %114 = tpu.reciprocal %113 {approx = true} : vector<8x1xf32> -> vector<8x1xf32>
    %115 = vector.broadcast %114 : vector<8x1xf32> to vector<8x8xf32>
    %116 = arith.mulf %111, %115 : vector<8x8xf32>
    %117 = arith.truncf %116 : vector<8x8xf32> to vector<8x8xbf16>
    %118 = vector.extract_strided_slice %28 {offsets = [0, 96], sizes = [8, 32], strides = [1, 1]} : vector<8x128xbf16> to vector<8x32xbf16>
    %cst_54 = arith.constant dense<0.000000e+00> : vector<8x32xf32>
    %119 = tpu.matmul %117, %118, %cst_54 {dimension_numbers = #tpu.dot_dimension_numbers<[1], [0], [0], [1], [0, 0, 1, 1], [], []>} : vector<8x8xbf16>, vector<8x32xbf16>, vector<8x32xf32> -> vector<8x32xf32>
    %120 = vector.extract_strided_slice %29 {offsets = [96, 0], sizes = [32, 128], strides = [1, 1]} : vector<128x128xf32> to vector<32x128xf32>
    %cst_55 = arith.constant dense<0.000000e+00> : vector<8x128xf32>
    %121 = tpu.matmul %119, %120, %cst_55 {dimension_numbers = #tpu.dot_dimension_numbers<[1], [0], [0], [1], [0, 0, 1, 1], [], []>} : vector<8x32xf32>, vector<32x128xf32>, vector<8x128xf32> -> vector<8x128xf32>
    %122 = arith.addf %99, %121 : vector<8x128xf32>
    %c0_56 = arith.constant 0 : index
    %c0_57 = arith.constant 0 : index
    %123 = vector.load %arg13[%c0_56, %c0_57] : memref<1x128xf32, #tpu.memory_space<vmem>>, vector<1x128xf32>
    %124 = vector.broadcast %123 : vector<1x128xf32> to vector<8x128xf32>
    %125 = arith.addf %122, %124 : vector<8x128xf32>
    %126 = arith.addf %1, %125 : vector<8x128xf32>
    %cst_58 = arith.constant dense<0.000000e+00> : vector<8xf32>
    %127 = vector.multi_reduction <add>, %126, %cst_58 [1] : vector<8x128xf32> to vector<8xf32>
    %128 = vector.shape_cast %127 : vector<8xf32> to vector<8x1xf32>
    %cst_59 = arith.constant 1.280000e+02 : f32
    %129 = vector.broadcast %cst_59 : f32 to vector<8x1xf32>
    %130 = arith.divf %128, %129 : vector<8x1xf32>
    %131 = vector.broadcast %130 : vector<8x1xf32> to vector<8x128xf32>
    %132 = arith.subf %126, %131 : vector<8x128xf32>
    %133 = arith.mulf %132, %132 : vector<8x128xf32>
    %cst_60 = arith.constant dense<0.000000e+00> : vector<8xf32>
    %134 = vector.multi_reduction <add>, %133, %cst_60 [1] : vector<8x128xf32> to vector<8xf32>
    %135 = vector.shape_cast %134 : vector<8xf32> to vector<8x1xf32>
    %cst_61 = arith.constant 1.280000e+02 : f32
    %136 = vector.broadcast %cst_61 : f32 to vector<8x1xf32>
    %137 = arith.divf %135, %136 : vector<8x1xf32>
    %cst_62 = arith.constant 9.99999974E-6 : f32
    %138 = vector.broadcast %cst_62 : f32 to vector<8x1xf32>
    %139 = arith.addf %137, %138 : vector<8x1xf32>
    %140 = math.rsqrt %139 : vector<8x1xf32>
    %141 = vector.broadcast %140 : vector<8x1xf32> to vector<8x128xf32>
    %142 = arith.mulf %132, %141 : vector<8x128xf32>
    %c0_63 = arith.constant 0 : index
    %c0_64 = arith.constant 0 : index
    %143 = vector.load %arg14[%c0_63, %c0_64] : memref<1x128xf32, #tpu.memory_space<vmem>>, vector<1x128xf32>
    %144 = vector.broadcast %143 : vector<1x128xf32> to vector<8x128xf32>
    %145 = arith.mulf %142, %144 : vector<8x128xf32>
    %c0_65 = arith.constant 0 : index
    %c0_66 = arith.constant 0 : index
    %146 = vector.load %arg15[%c0_65, %c0_66] : memref<1x128xf32, #tpu.memory_space<vmem>>, vector<1x128xf32>
    %147 = vector.broadcast %146 : vector<1x128xf32> to vector<8x128xf32>
    %148 = arith.addf %145, %147 : vector<8x128xf32>
    %c0_67 = arith.constant 0 : index
    %c0_68 = arith.constant 0 : index
    %c0_69 = arith.constant 0 : index
    %149 = vector.load %arg16[%c0_67, %c0_68, %c0_69] : memref<1x8x128xf32, #tpu.memory_space<vmem>>, vector<1x8x128xf32>
    %150 = vector.shape_cast %149 : vector<1x8x128xf32> to vector<8x128xf32>
    %151 = vector.shape_cast %148 : vector<8x128xf32> to vector<1x8x128xf32>
    tpu.vector_store %arg16[%c0_67, %c0_68, %c0_69], %151 {strides = array<i32>} : memref<1x8x128xf32, #tpu.memory_space<vmem>>, vector<1x8x128xf32>,
    return
  }
  func.func @transform_0(%arg0: i32, %arg1: i32) -> (i32, i32, i32) {
    %c0_i32 = arith.constant 0 : i32
    %c0_i32_0 = arith.constant 0 : i32
    return %arg0, %arg1, %c0_i32 : i32, i32, i32
  }
  func.func @transform_1(%arg0: i32, %arg1: i32) -> (i32, i32, i32) {
    %c0_i32 = arith.constant 0 : i32
    %c0_i32_0 = arith.constant 0 : i32
    %c0_i32_1 = arith.constant 0 : i32
    return %arg0, %c0_i32, %c0_i32_0 : i32, i32, i32
  }
  func.func @transform_2(%arg0: i32, %arg1: i32) -> (i32, i32, i32) {
    %c0_i32 = arith.constant 0 : i32
    %c0_i32_0 = arith.constant 0 : i32
    %c0_i32_1 = arith.constant 0 : i32
    return %arg0, %c0_i32, %c0_i32_0 : i32, i32, i32
  }
  func.func @transform_3(%arg0: i32, %arg1: i32) -> (i32, i32, i32) {
    %c0_i32 = arith.constant 0 : i32
    %c0_i32_0 = arith.constant 0 : i32
    return %arg0, %arg1, %c0_i32 : i32, i32, i32
  }
  func.func @transform_4(%arg0: i32, %arg1: i32) -> (i32, i32) {
    %c0_i32 = arith.constant 0 : i32
    %c0_i32_0 = arith.constant 0 : i32
    %c0_i32_1 = arith.constant 0 : i32
    return %c0_i32, %c0_i32_0 : i32, i32
  }
  func.func @transform_5(%arg0: i32, %arg1: i32) -> (i32, i32) {
    %c0_i32 = arith.constant 0 : i32
    %c0_i32_0 = arith.constant 0 : i32
    %c0_i32_1 = arith.constant 0 : i32
    return %c0_i32, %c0_i32_0 : i32, i32
  }
  func.func @transform_6(%arg0: i32, %arg1: i32) -> (i32, i32) {
    %c0_i32 = arith.constant 0 : i32
    %c0_i32_0 = arith.constant 0 : i32
    %c0_i32_1 = arith.constant 0 : i32
    return %c0_i32, %c0_i32_0 : i32, i32
  }
  func.func @transform_7(%arg0: i32, %arg1: i32) -> (i32, i32) {
    %c0_i32 = arith.constant 0 : i32
    %c0_i32_0 = arith.constant 0 : i32
    %c0_i32_1 = arith.constant 0 : i32
    return %c0_i32, %c0_i32_0 : i32, i32
  }
  func.func @transform_8(%arg0: i32, %arg1: i32) -> (i32, i32) {
    %c0_i32 = arith.constant 0 : i32
    %c0_i32_0 = arith.constant 0 : i32
    %c0_i32_1 = arith.constant 0 : i32
    return %c0_i32, %c0_i32_0 : i32, i32
  }
  func.func @transform_9(%arg0: i32, %arg1: i32) -> (i32, i32) {
    %c0_i32 = arith.constant 0 : i32
    %c0_i32_0 = arith.constant 0 : i32
    %c0_i32_1 = arith.constant 0 : i32
    return %c0_i32, %c0_i32_0 : i32, i32
  }
  func.func @transform_10(%arg0: i32, %arg1: i32) -> (i32, i32) {
    %c0_i32 = arith.constant 0 : i32
    %c0_i32_0 = arith.constant 0 : i32
    %c0_i32_1 = arith.constant 0 : i32
    return %c0_i32, %c0_i32_0 : i32, i32
  }
  func.func @transform_11(%arg0: i32, %arg1: i32) -> (i32, i32) {
    %c0_i32 = arith.constant 0 : i32
    %c0_i32_0 = arith.constant 0 : i32
    %c0_i32_1 = arith.constant 0 : i32
    return %c0_i32, %c0_i32_0 : i32, i32
  }
  func.func @transform_12(%arg0: i32, %arg1: i32) -> (i32, i32) {
    %c0_i32 = arith.constant 0 : i32
    %c0_i32_0 = arith.constant 0 : i32
    %c0_i32_1 = arith.constant 0 : i32
    return %c0_i32, %c0_i32_0 : i32, i32
  }
  func.func @transform_13(%arg0: i32, %arg1: i32) -> (i32, i32) {
    %c0_i32 = arith.constant 0 : i32
    %c0_i32_0 = arith.constant 0 : i32
    %c0_i32_1 = arith.constant 0 : i32
    return %c0_i32, %c0_i32_0 : i32, i32
  }
  func.func @transform_14(%arg0: i32, %arg1: i32) -> (i32, i32, i32) {
    %c0_i32 = arith.constant 0 : i32
    %c0_i32_0 = arith.constant 0 : i32
    return %arg0, %arg1, %c0_i32 : i32, i32, i32
  }
}

</mosaic_0001>

<bundles_post_ra>
// kernel: tpu_custom_call.1
= control target key start
LH: loop header
LB: loop body
LE: loop exit
PB: predicated region body
PF: predicated region fallthrough
CT: control target
= control target key end

     0   :  { %s3239_s0 = inlined_call_operand.hbm [shape: f32[2,8,128], index: 0, kind: input, shape index: {}]   ;;  %s3240_s1 = inlined_call_operand.hbm [shape: f32[2,8,128], index: 1, kind: input, shape index: {}]   ;;  %s3241_s2 = inlined_call_operand.hbm [shape: f32[2,8,128], index: 2, kind: input, shape index: {}]   ;;  %s3242_s3 = inlined_call_operand.vmem [shape: s8[2,8,8], index: 3, kind: input, shape index: {}]   ;;  %s3243_s4 = inlined_call_operand.hbm [shape: f32[128,128], index: 4, kind: input, shape index: {}]   ;;  %s3244_s5 = inlined_call_operand.vmem [shape: f32[1,128], index: 5, kind: input, shape index: {}]   ;;  %s3245_s6 = inlined_call_operand.hbm [shape: f32[128,128], index: 6, kind: input, shape index: {}]   ;;  %s3246_s7 = inlined_call_operand.vmem [shape: f32[1,128], index: 7, kind: input, shape index: {}]   ;;  %s3247_s8 = inlined_call_operand.hbm [shape: f32[128,128], index: 8, kind: input, shape index: {}]   ;;  %s3248_s9 = inlined_call_operand.vmem [shape: f32[1,128], index: 9, kind: input, shape index: {}]   ;;  %s3249_s10 = inlined_call_operand.hbm [shape: f32[128,128], index: 10, kind: input, shape index: {}]   ;;  %s3250_s11 = inlined_call_operand.vmem [shape: f32[1,128], index: 11, kind: input, shape index: {}]   ;;  %s3251_s12 = inlined_call_operand.vmem [shape: f32[1,128], index: 12, kind: input, shape index: {}]   ;;  %s3252_s13 = inlined_call_operand.vmem [shape: f32[1,128], index: 13, kind: input, shape index: {}]   ;;  %s3253_s14 = inlined_call_operand.hbm [shape: f32[2,8,128], index: 14, kind: output, shape index: {}]  }
   0x1   :  { %3272 = sst [smem:[#allocation27_spill]] %s3240_s1 }
   0x2   :  { %3273 = sst [smem:[#allocation28_spill]] %s3243_s4 }
   0x3   :  { %3274 = sst [smem:[#allocation29_spill]] %s3245_s6 }
   0x4   :  { %3275 = sst [smem:[#allocation30_spill]] %s3247_s8 }
   0x5   :  { %3276 = sst [smem:[#allocation31_spill]] %s3248_s9 }
   0x6   :  { %3277 = sst [smem:[#allocation32_spill]] %s3250_s11 }
   0x7   :  { %3278 = sst [smem:[#allocation33_spill]] %s3251_s12 }
   0x8   :  { %3279 = sst [smem:[#allocation34_spill]] %s3252_s13 }
   0x9   :  { %3280 = sst [smem:[#allocation35_spill]] %s3253_s14 }
   0xa   :  { %19 = vsyncpa [#allocation3], 0 }
   0xb   :  { %21 = vsyncpa [#allocation3 + $0x1], 0 }
   0xc   :  { %22 = vsyncpa [#allocation6], 0 }
   0xd   :  { %24 = vsyncpa [#allocation6 + $0x1], 0 }
   0xe   :  { %25 = vsyncpa [#allocation9], 0 }
   0xf   :  { %26 = vsyncpa [#allocation12], 0 }
  0x10   :  { %27 = vsyncpa [#allocation4], 0 }
  0x11   :  { %29 = vsyncpa [#allocation4 + $0x1], 0  ;;  %s2773_s29 = smov 0   ;;  %s2775_s30 = smov 0  }
  0x12   :  { %s2777_s15 = smov 0   ;;  %s2779_s16 = smov 0  }
  0x13   :  { %s2781_s17 = smov 0   ;;  %s2783_s18 = smov 0  }
  0x14 LB: > { %3281 = sst [smem:[#allocation20_spill]] %s2661_s29  ;;  %s2804_s19 = sadd.s32 4294967295, %s2681_s18   ;;  %s2681_s18 = sphi %s2783_s18, %s35_s18   ;;  %s2677_s17 = sphi %s2781_s17, %s3327_s17   ;;  %s2673_s16 = sphi %s2779_s16, %s3326_s16   ;;  %s2669_s15 = sphi %s2777_s15, %s3330_s15   ;;  %s2665_s30 = sphi %s2775_s30, %s3329_s30   ;;  %s2661_s29 = sphi %s2773_s29, %s3328_s29  }
  0x15   : > { %3282 = sst [smem:[#allocation21_spill]] %s2677_s17  ;;  %p1935_p0 = scmp.ge.s32.totalorder %s2681_s18, 1 }
  0x16   : > { %3283 = sst [smem:[#allocation22_spill]] %s2681_s18  ;;  %p3268_p1 = scmp.eq.s32.totalorder %s2804_s19, 0 }
  0x17   : > { %p398_p2 = scmp.lt.s32.totalorder %s2681_s18, 3  ;;  %s2683_s21 = smov [#allocation8]  }
  0x18   : > { %s410_s22 = sshll.u32 %s2683_s21, 4  ;;  %s2684_s24 = smov [#allocation11]   ;;  %s411_s22 = int_to_ptr.vmem [resolvable:$true] %s410_s22 }
  0x19   : > { %p2809_p3 = pnand %p1935_p0, %p398_p2  ;;  %s442_s25 = sshll.u32 %s2684_s24, 4  ;;  %s443_s25 = int_to_ptr.vmem [resolvable:$true] %s442_s25 }
  0x1a   : > { %s2412_s26 = scalar_lea.vmem %s411_s22, 2048  ;;  %p2420_p11 = scmp.lt.s32.totalorder %s411_s22, %s411_s22 }
  0x1b   : > { %p2287_p4 = pneg %p2809_p3  ;;  %p2413_p8 = scmp.ne.s32.totalorder %s411_s22, %s2412_s26 }
  0x1c   : > { %p2421_p12 = scmp.lt.s32.totalorder %s2412_s26, %s2412_s26 }
  0x1d   : > { %p2818_p6 = pnand %p2287_p4, %p3268_p1 }
  0x1e   : > { %p2422_p13 = por %p2421_p12, %p2420_p11 }
  0x1f   : > { %p3269_p7 = pneg %p2818_p6 }
  0x21   : > { %p2415_p9 = pnand %p2413_p8, %p3269_p7 }
  0x23   : > { %p2416_p10 = pneg %p2415_p9 }
  0x25   : > { %p2423_p0 = pnand %p2422_p13, %p2416_p10 }
  0x27   : > { %2426 = shalt.err (!%p2423_p0)
}
  0x28   : > { %s3255_s27 = smov 128   ;;  %s3257_s28 = smov 8  }
  0x29   : > { %s3286_s4 = sld [smem:[#allocation28_spill]]  ;;  %s2438_s14 = scalar_lea.vmem %s443_s25, 2048 }
  0x2a   : > { %p2439_p2 = scmp.ne.s32.totalorder %s443_s25, %s2438_s14  ;;  %p2446_p9 = scmp.lt.s32.totalorder %s443_s25, %s443_s25 }
  0x2b   : > { %p2447_p10 = scmp.lt.s32.totalorder %s2438_s14, %s2438_s14 }
  0x2c   : > { %p2441_p4 = pnand %p2439_p2, %p3269_p7 }
  0x2d   : > { %p2448_p11 = por %p2447_p10, %p2446_p9 }
  0x2e   : > { %p2442_p8 = pneg %p2441_p4 }
  0x2f   : > { %2290 = dma.hbm_to_vmem [thread:$0]  (!%p2818_p6), %s3286_s4, 2048, %s411_s22, [#allocation9], %s3255_s27, %s3255_s27, %s3257_s28  }
  0x30   : > { %p2449_p12 = pnand %p2448_p11, %p2442_p8 }
  0x32   : > { %2452 = shalt.err (!%p2449_p12)
}
  0x33   : > { %s3287_s8 = sld [smem:[#allocation30_spill]]  ;;  %s1934_s14 = sadd.s32 4294967294, %s2681_s18  }
  0x34   : > { %s47_s22 = sadd.s32 1, %s2677_s17  ;;  %s56_s21 = sadd.s32 1, %s2669_s15 }
  0x35   : > { %p49_p13 = scmp.ge.s32.totalorder %s47_s22, 2  ;;  %p63_p0 = scmp.ne.s32.totalorder %s2669_s15, %s2665_s30 }
  0x36   : > { %p64_p2 = scmp.eq.s32.totalorder %s2681_s18, 0  ;;  %p69_p8 = scmp.ne.s32.totalorder %s2665_s30, %s2661_s29 }
  0x37   : > { %s3332_s22 = smov (%p49_p13, %s47_s22), 0  ;;  %p385_p9 = scmp.eq.s32.totalorder %s2804_s19, 1 }
  0x38   : > { %3288 = sst [smem:[#allocation23_spill]] %s3332_s22  ;;  %p2854_p4 = por %p64_p2, %p63_p0 }
  0x39   : > { %2296 = dma.hbm_to_vmem [thread:$0]  (!%p2818_p6), %s3287_s8, 2048, %s443_s25, [#allocation12], %s3255_s27, %s3255_s27, %s3257_s28  }
  0x3a   : > { %s51_s25 = ssub.s32 %s2677_s17, %s3332_s22  ;;  %p2865_p11 = por %p3268_p1, %p69_p8 }
  0x3b   : > { %p54_p10 = scmp.eq.s32.totalorder %s51_s25, 0  ;;  %p2869_p12 = por %p385_p9, %p63_p0 }
  0x3c   : > { %p391_p13 = scmp.eq.s32.totalorder %s1934_s14, 1  ;;  %p2318_p5 = scmp.lt.s32.totalorder %s2681_s18, 2 }
  0x3d   : > { %s3291_s26 = scalar_select %p2869_p12, 1, 0 }
  0x3e   : > { %s2874_s27 = scalar_select %p54_p10, %s2669_s15, %s56_s21  }
  0x3f   : > { %3292 = sst [smem:[#allocation24_spill]] %s3291_s26  ;;  %p2876_p2 = por %p391_p13, %p69_p8 }
  0x40   : > { %3293 = sst [smem:[#allocation25_spill]] %s2874_s27  ;;  %s3263_s4 = sand.u32 1, %s2669_s15  }
  0x41   : > { %s3294_s28 = scalar_select %p2876_p2, 1, 0 }
  0x42   : > { %s2883_s8 = sshll.u32 %s2677_s17, 7  ;;  %s2887_s25 = sshll.u32 %s3263_s4, 3 }
  0x43   : > { %3295 = sst [smem:[#allocation26_spill]] %s3294_s28  ;;  %p2891_p0 = pnand %p2318_p5, %p2854_p4 }
  0x44   : > { %s500_s14 = sand.u32 1, %s2681_s18   ;;  %s3297_s1 = sld [smem:[#allocation27_spill]] }
  0x45   : > { %s504_s29 = scalar_lea.vmem [#allocation5], %s2887_s25  ;;  %s2901_s12 = scalar_lea.sflag [#allocation6], %s500_s14 }
  0x46   : > { %s511_s17 = sshll.u32 %s504_s29, 4  ;;  %p3270_p8 = pneg %p2891_p0  ;;  %s512_s17 = int_to_ptr.vmem [resolvable:$true] %s511_s17 }
  0x47   : > { %s2466_s13 = scalar_lea.vmem %s512_s17, 128  ;;  %s2687_s4 = smov [#allocation5]  }
  0x48   : > { %p2467_p9 = scmp.ne.s32.totalorder %s512_s17, %s2466_s13  ;;  %s2471_s26 = sshll.u32 %s2687_s4, 4  ;;  %s2472_s26 = int_to_ptr.vmem [resolvable:$false] %s2471_s26 }
  0x49   : > { %s2473_s18 = scalar_lea.vmem %s2472_s26, 256  ;;  %p2474_p10 = scmp.lt.s32.totalorder %s512_s17, %s2472_s26 }
  0x4a   : > { %s509_s28 = scalar_lea.hbm %s3297_s1, %s2883_s8  ;;  %p2469_p5 = pnand %p2467_p9, %p3270_p8 }
  0x4b   : > { %p2475_p13 = scmp.lt.s32.totalorder %s2473_s18, %s2466_s13 }
  0x4c   : > { %p2470_p4 = pneg %p2469_p5 }
  0x4d   : > { %p2476_p1 = por %p2475_p13, %p2474_p10 }
  0x4f   : > { %p2477_p7 = pnand %p2476_p1, %p2470_p4 }
  0x51   : > { %2480 = shalt.err (!%p2477_p7)
}
  0x52   : > { %2306 = dma.hbm_to_vmem [thread:$0]  (!%p2891_p0), %s509_s28, 128, %s512_s17, %s2901_s12  }
  0x53   : > { %s2688_s29 = smov [#allocation10]   ;;  %s2689_s14 = smov [#allocation13]  }
  0x54   : > { %s426_s27 = sshll.u32 %s2688_s29, 4  ;;  %s458_s21 = sshll.u32 %s2689_s14, 4  ;;  %s427_s27 = int_to_ptr.vmem [resolvable:$true] %s426_s27  ;;  %s459_s21 = int_to_ptr.vmem [resolvable:$true] %s458_s21 }
  0x55   : > { %s2492_s1 = scalar_lea.vmem %s427_s27, 2048  ;;  %p3298_p5 = pneg %p2818_p6 }
  0x56   : > { %p2493_p9 = scmp.ne.s32.totalorder %s427_s27, %s2492_s1  ;;  %p2500_p12 = scmp.lt.s32.totalorder %s427_s27, %s427_s27 }
  0x57   : > { %p2501_p10 = scmp.lt.s32.totalorder %s2492_s1, %s2492_s1 }
  0x58   : > { %p2495_p8 = pnand %p2493_p9, %p3298_p5 }
  0x59   : > { %p2502_p1 = por %p2501_p10, %p2500_p12 }
  0x5a   : > { %p2496_p2 = pneg %p2495_p8 }
  0x5c   : > { %p2503_p7 = pnand %p2502_p1, %p2496_p2 }
  0x5e   : > { %2506 = shalt.err (!%p2503_p7)
}
  0x5f   : > { %s3299_s4 = smov 8   ;;  %s3300_s17 = smov 128  }
  0x60   : > { %s3301_s6 = sld [smem:[#allocation29_spill]]  ;;  %s2518_s26 = scalar_lea.vmem %s459_s21, 2048 }
  0x61   : > { %p2519_p4 = scmp.ne.s32.totalorder %s459_s21, %s2518_s26  ;;  %p3302_p8 = pmov %p3298_p5 }
  0x62   : > { %p2526_p12 = scmp.lt.s32.totalorder %s459_s21, %s459_s21  ;;  %p2527_p2 = scmp.lt.s32.totalorder %s2518_s26, %s2518_s26 }
  0x63   : > { %p2521_p13 = pnand %p2519_p4, %p3302_p8 }
  0x64   : > { %p2528_p5 = por %p2527_p2, %p2526_p12 }
  0x65   : > { %p2522_p9 = pneg %p2521_p13 }
  0x66   : > { %2293 = dma.hbm_to_vmem [thread:$0]  (!%p2818_p6), %s3301_s6, 2048, %s427_s27, [#allocation9], %s3300_s17, %s3300_s17, %s3299_s4  }
  0x67   : > { %p2529_p10 = pnand %p2528_p5, %p2522_p9 }
  0x69   : > { %2532 = shalt.err (!%p2529_p10)
}
  0x6a   : > { %2299 = dma.hbm_to_vmem [thread:$0]  (!%p2818_p6), %s3249_s10, 2048, %s459_s21, [#allocation12], %s3300_s17, %s3300_s17, %s3299_s4  }
  0x6b   : > { %s491_s14 = scalar_lea.hbm %s3239_s0, %s2883_s8  ;;  %s485_s18 = scalar_lea.vmem [#allocation2], %s2887_s25 }
  0x6c   : > { %s493_s28 = sshll.u32 %s485_s18, 4  ;;  %s527_s6 = scalar_lea.hbm %s3241_s2, %s2883_s8  ;;  %s494_s28 = int_to_ptr.vmem [resolvable:$true] %s493_s28 }
  0x6d   : > { %s3303_s11 = sand.u32 1, %s2669_s15   ;;  %s2546_s1 = scalar_lea.vmem %s494_s28, 128 }
  0x6e   : > { %s482_s9 = scalar_lea.sflag [#allocation3], %s3303_s11  ;;  %p2547_p1 = scmp.ne.s32.totalorder %s494_s28, %s2546_s1 }
  0x6f   : > { %p3304_p7 = pneg %p2891_p0  ;;  %s2690_s21 = smov [#allocation2]  }
  0x70   : > { %s2551_s4 = sshll.u32 %s2690_s21, 4  ;;  %s2552_s4 = int_to_ptr.vmem [resolvable:$false] %s2551_s4 }
  0x71   : > { %p2549_p4 = pnand %p2547_p1, %p3304_p7  ;;  %s2553_s17 = scalar_lea.vmem %s2552_s4, 256 }
  0x72   : > { %p2554_p6 = scmp.lt.s32.totalorder %s494_s28, %s2552_s4  ;;  %p2555_p13 = scmp.lt.s32.totalorder %s2553_s17, %s2546_s1 }
  0x73   : > { %p2550_p8 = pneg %p2549_p4 }
  0x74   : > { %p2556_p9 = por %p2555_p13, %p2554_p6 }
  0x76   : > { %p2557_p12 = pnand %p2556_p9, %p2550_p8 }
  0x78   : > { %2560 = shalt.err (!%p2557_p12)
}
  0x79   : > { %2303 = dma.hbm_to_vmem [thread:$0]  (!%p2891_p0), %s491_s14, 128, %s494_s28, %s482_s9  }
  0x7a   : > { %s522_s11 = scalar_lea.vmem [#allocation7], %s2887_s25  ;;  %p3305_p5 = pmov %p3304_p7 }
  0x7b   : > { %s529_s13 = sshll.u32 %s522_s11, 4  ;;  %s2691_s27 = smov [#allocation7]   ;;  %s530_s13 = int_to_ptr.vmem [resolvable:$true] %s529_s13 }
  0x7c   : > { %s2574_s29 = scalar_lea.vmem %s530_s13, 128  ;;  %s2579_s18 = sshll.u32 %s2691_s27, 4  ;;  %s2580_s18 = int_to_ptr.vmem [resolvable:$false] %s2579_s18 }
  0x7d   : > { %p2575_p2 = scmp.ne.s32.totalorder %s530_s13, %s2574_s29  ;;  %s2581_s23 = scalar_lea.vmem %s2580_s18, 256 }
  0x7e   : > { %p2582_p7 = scmp.lt.s32.totalorder %s530_s13, %s2580_s18  ;;  %p2583_p4 = scmp.lt.s32.totalorder %s2581_s23, %s2574_s29 }
  0x7f   : > { %p2577_p10 = pnand %p2575_p2, %p3305_p5 }
  0x80   : > { %p2584_p8 = por %p2583_p4, %p2582_p7 }
  0x81   : > { %p2578_p1 = pneg %p2577_p10 }
  0x83   : > { %p2585_p6 = pnand %p2584_p8, %p2578_p1 }
  0x85   : > { %2588 = shalt.err (!%p2585_p6)
}
  0x86   : > { %2309 = dma.hbm_to_vmem [thread:$0]  (!%p2891_p0), %s527_s6, 128, %s530_s13, %s2901_s12  }
  0x87   : > { %548 = sbr.rel (%p2809_p3) target bundleno = 3037 (0xbdd), region = 76  ;;  %s2964_s14 = sand.u32 (!%p2809_p3), 1, %s2665_s30  }
  0x88   : > { %s2967_s28 = sshll.u32 (!%p2809_p3), %s2964_s14, 3  ;;  %s551_s22 = scalar_lea.sflag (!%p2809_p3), [#allocation3], %s2964_s14 }
  0x89   : > { %s554_s26 = scalar_lea.vmem (!%p2809_p3), [#allocation2], %s2967_s28 }
  0x8c   : > { %2640 = dma.done.wait (%p2865_p11), %s551_s22, 128  }
  0x8d   : > { %2642 = vsyncadd (%p2865_p11), %s551_s22, 4294967168  ;;  %s559_s6 = sand.u32 1, %s2804_s19   ;;  %s563_s12 = scalar_lea.vmem [#allocation5], %s2967_s28 }
  0x8e   : > { %s560_s8 = scalar_lea.sflag [#allocation6], %s559_s6 }
  0x8f   : > { %2644 = dma.done.wait (%p2865_p11), %s560_s8, 256  }
  0x90   : > { %2646 = vsyncadd (%p2865_p11), %s560_s8, 4294967040  ;;  %s572_s20 = scalar_lea.vmem [#allocation7], %s2967_s28  ;;  %p3306_p3 = scmp.eq.s32.totalorder %s2804_s19, 0 }
  0x92   : > { %2648 = dma.done.wait (%p3306_p3), [#allocation9], 4096   ;;  %p3307_p0 = pmov %p3306_p3 }
  0x94   : > { %2650 = vsyncadd (%p3307_p0), [#allocation9], 4294963200  ;;  %p3308_p13 = pmov %p3307_p0 }
  0x95   : > { %p3309_p9 = pmov %p3307_p0 }
  0x96   : > { %2652 = dma.done.wait (%p3308_p13), [#allocation12], 4096  }
  0x97   : > { %2654 = vsyncadd (%p3309_p9), [#allocation12], 4294963200  ;;  %v2692_v0 = vmov 0.0   ;;  %vm2693_vm0 = vmmov 0   ;;  %v772_v1 = vld [vmem:[#allocation10 + $0x78] sm:$0xff]  ;;  %v771_v2 = vld [vmem:[#allocation10 + $0x70] sm:$0xff] }
  0x98   : > { %2101 = vmatprep.subr.mxu1 %v2692_v0  ;;  %2066 = vmatprep.subr.mxu0 %v2692_v0  ;;  %v679_v3 = vld [vmem:[#allocation8 + $0x78] sm:$0xff]  ;;  %v678_v4 = vld [vmem:[#allocation8 + $0x70] sm:$0xff]  ;;  %v770_v5 = vld [vmem:[#allocation10 + $0x68] sm:$0xff]  ;;  %vm962_vm1 = vcmask 261120   ;;  %s2694_s4 = smov 96   ;;  %p650_p11 = scmp.lt.s32.totalorder %s2673_s16, 1 }
  0x99   : > { %2133 = vmatprep.mubr.msk.f32.mxu1 %vm2693_vm0, %v2692_v0  ;;  %2098 = vmatprep.mubr.msk.f32.mxu0 %vm2693_vm0, %v2692_v0  ;;  %v677_v6 = vld [vmem:[#allocation8 + $0x68] sm:$0xff]  ;;  %v769_v7 = vld [vmem:[#allocation10 + $0x60] sm:$0xff]  ;;  %v768_v9 = vld [vmem:[#allocation10 + $0x58] sm:$0xff]  ;;  %vm1011_vm3 = vcmask 64512   ;;  %s3312_s9 = sld [smem:[#allocation31_spill]]  ;;  %vm1027_vm4 = vcmask 1043456  }
  0x9a   : > { %2102 = vmatpush3.msra.mxu1 %v772_v1  ;;  %2067 = vmatpush3.msra.mxu0 %v679_v3  ;;  %v676_v8 = vld [vmem:[#allocation8 + $0x60] sm:$0xff]  ;;  %v675_v10 = vld [vmem:[#allocation8 + $0x58] sm:$0xff]  ;;  %v767_v11 = vld [vmem:[#allocation10 + $0x50] sm:$0xff]  ;;  %s651_s17 = scalar_select %p650_p11, %s2673_s16, 1 }
  0x9b   : > { %2103 = vmatprep.subr.mxu1 %v2692_v0  ;;  %2068 = vmatprep.subr.mxu0 %v2692_v0  ;;  %v674_v12 = vld [vmem:[#allocation8 + $0x50] sm:$0xff]  ;;  %v766_v13 = vld [vmem:[#allocation10 + $0x48] sm:$0xff]  ;;  %v765_v15 = vld [vmem:[#allocation10 + $0x40] sm:$0xff]  ;;  %s2695_s25 = smov 64   ;;  %s2696_s22 = smov 32  }
  0x9c   : > { %2104 = vmatpush3.msra.mxu1 %v771_v2  ;;  %2069 = vmatpush3.msra.mxu0 %v678_v4  ;;  %v673_v14 = vld [vmem:[#allocation8 + $0x48] sm:$0xff]  ;;  %v672_v16 = vld [vmem:[#allocation8 + $0x40] sm:$0xff]  ;;  %v764_v17 = vld [vmem:[#allocation10 + $0x38] sm:$0xff]  ;;  %s1956_s11 = sshll.u32 %s651_s17, 1  ;;  %s3313_s8 = sld [smem:[#allocation32_spill]] }
  0x9d   : > { %2105 = vmatprep.subr.mxu1 %v2692_v0  ;;  %2070 = vmatprep.subr.mxu0 %v2692_v0  ;;  %v671_v18 = vld [vmem:[#allocation8 + $0x38] sm:$0xff]  ;;  %v763_v19 = vld [vmem:[#allocation10 + $0x30] sm:$0xff]  ;;  %v762_v21 = vld [vmem:[#allocation10 + $0x28] sm:$0xff]  ;;  %s656_s27 = scalar_lea.vmem %s3242_s3, %s1956_s11  ;;  %s3315_s24 = sld [smem:[#allocation33_spill]] }
  0x9e   : > { %2106 = vmatpush3.msra.mxu1 %v770_v5  ;;  %2071 = vmatpush3.msra.mxu0 %v677_v6  ;;  %v670_v20 = vld [vmem:[#allocation8 + $0x30] sm:$0xff]  ;;  %v669_v22 = vld [vmem:[#allocation8 + $0x28] sm:$0xff]  ;;  %v761_v23 = vld [vmem:[#allocation10 + $0x20] sm:$0xff]  ;;  %s1976_s17 = sshll.u32 %s2673_s16, 7  ;;  %s649_s11 = scalar_lea.vmem [#allocation14], %s2967_s28 }
  0x9f   : > { %2107 = vmatprep.subr.mxu1 %v2692_v0  ;;  %2072 = vmatprep.subr.mxu0 %v2692_v0  ;;  %v668_v24 = vld [vmem:[#allocation8 + $0x20] sm:$0xff]  ;;  %v760_v25 = vld [vmem:[#allocation10 + $0x18] sm:$0xff]  ;;  %v759_v27 = vld [vmem:[#allocation10 + $0x10] sm:$0xff]  ;;  %s1757_s13 = sshll.u32 %s649_s11, 4  ;;  %s3317_s18 = sld [smem:[#allocation35_spill]]  ;;  %s1758_s13 = int_to_ptr.vmem [resolvable:$true] %s1757_s13 }
  0xa0   : > { %2108 = vmatpush3.msra.mxu1 %v769_v7  ;;  %2073 = vmatpush3.msra.mxu0 %v676_v8  ;;  %v667_v26 = vld [vmem:[#allocation8 + $0x18] sm:$0xff]  ;;  %v666_v28 = vld [vmem:[#allocation8 + $0x10] sm:$0xff]  ;;  %v758_v29 = vld [vmem:[#allocation10 + $0x8] sm:$0xff] }
  0xa1   : > { %2109 = vmatprep.subr.mxu1 %v2692_v0  ;;  %2074 = vmatprep.subr.mxu0 %v2692_v0  ;;  %v665_v30 = vld [vmem:[#allocation8 + $0x8] sm:$0xff]  ;;  %v757_v31 = vld [vmem:[#allocation10] sm:$0xff]  ;;  %v3029_v34 = vld [vmem:[%s554_s26] sm:$0xff]  ;;  %s2697_s26 = smov [#allocation14]  }
  0xa2   : > { %2110 = vmatpush3.msra.mxu1 %v768_v9  ;;  %2075 = vmatpush3.msra.mxu0 %v675_v10  ;;  %v659_v32 = vld [vmem:[%s563_s12] sm:$0xff]  ;;  %v1958_v35 = vld [vmem:[%s3246_s7] ss:$0 sm:$0xff]  ;;  %v865_v46 = vld [vmem:[#allocation11 + $0x78] sm:$0xff]  ;;  %s3314_s12 = sld [smem:[#allocation24_spill]]  ;;  %s2593_s6 = sshll.u32 %s2697_s26, 4  ;;  %s2594_s6 = int_to_ptr.vmem [resolvable:$false] %s2593_s6 }
  0xa3   : > { %2111 = vmatprep.subr.mxu1 %v2692_v0  ;;  %2076 = vmatprep.subr.mxu0 %v2692_v0  ;;  %v664_v33 = vld [vmem:[#allocation8] sm:$0xff]  ;;  %v1957_v36 = vld [vmem:[%s3244_s5] ss:$0 sm:$0xff]  ;;  %v863_v48 = vld [vmem:[#allocation11 + $0x68] sm:$0xff]  ;;  %s2595_s16 = scalar_lea.vmem %s2594_s6, 256  ;;  %p2596_p1 = scmp.lt.s32.totalorder %s1758_s13, %s2594_s6 }
  0xa4   : > { %2112 = vmatpush3.msra.mxu1 %v767_v11  ;;  %2077 = vmatpush3.msra.mxu0 %v674_v12  ;;  %v864_v47 = vld [vmem:[#allocation11 + $0x70] sm:$0xff]  ;;  %v862_v49 = vld [vmem:[#allocation11 + $0x60] sm:$0xff]  ;;  %v861_v50 = vld [vmem:[#allocation11 + $0x58] sm:$0xff] }
  0xa5   : > { %2113 = vmatprep.subr.mxu1 %v2692_v0  ;;  %2078 = vmatprep.subr.mxu0 %v2692_v0  ;;  %v860_v51 = vld [vmem:[#allocation11 + $0x50] sm:$0xff]  ;;  %v859_v52 = vld [vmem:[#allocation11 + $0x48] sm:$0xff]  ;;  %v858_v53 = vld [vmem:[#allocation11 + $0x40] sm:$0xff]  ;;  %s3318_s23 = smov %s3317_s18 }
  0xa6   : > { %2114 = vmatpush3.msra.mxu1 %v766_v13  ;;  %2079 = vmatpush3.msra.mxu0 %v673_v14  ;;  %v857_v54 = vld [vmem:[#allocation11 + $0x38] sm:$0xff]  ;;  %v856_v55 = vld [vmem:[#allocation11 + $0x30] sm:$0xff]  ;;  %v855_v56 = vld [vmem:[#allocation11 + $0x28] sm:$0xff] }
  0xa7   : > { %2115 = vmatprep.subr.mxu1 %v2692_v0  ;;  %2080 = vmatprep.subr.mxu0 %v2692_v0  ;;  %v854_v57 = vld [vmem:[#allocation11 + $0x20] sm:$0xff]  ;;  %v853_v58 = vld [vmem:[#allocation11 + $0x18] sm:$0xff]  ;;  %v852_v59 = vld [vmem:[#allocation11 + $0x10] sm:$0xff] }
  0xa8   : > { %2116 = vmatpush3.msra.mxu1 %v765_v15  ;;  %2081 = vmatpush3.msra.mxu0 %v672_v16  ;;  %v851_v60 = vld [vmem:[#allocation11 + $0x8] sm:$0xff]  ;;  %v850_v61 = vld [vmem:[#allocation11] sm:$0xff]  ;;  %v660_v62 = vld [vmem:[%s572_s20] sm:$0xff]  ;;  %p3319_p2 = scmp.ne.s32.totalorder %s3314_s12, 0 }
  0xa9   : > { %2117 = vmatprep.subr.mxu1 %v2692_v0  ;;  %2082 = vmatprep.subr.mxu0 %v2692_v0  ;;  %v661_v63 = vld [vmem:[%s656_s27] sm:$0x3] }
  0xaa   : > { %2118 = vmatpush3.msra.mxu1 %v764_v17  ;;  %2083 = vmatpush3.msra.mxu0 %v671_v18  ;;  %v662_v1 = vunpack.c.0.s8 %v661_v63  ;;  %v1959_v15 = vld [vmem:[%s3312_s9] ss:$0 sm:$0xff]  ;;  %s1755_s9 = scalar_lea.hbm %s3317_s18, %s1976_s17 }
  0xab   : > { %2119 = vmatprep.subr.mxu1 %v2692_v0  ;;  %2084 = vmatprep.subr.mxu0 %v2692_v0 }
  0xac   : > { %2120 = vmatpush3.msra.mxu1 %v763_v19  ;;  %2085 = vmatpush3.msra.mxu0 %v670_v20  ;;  %vm3085_vm2 = vcmp.ne.s32.totalorder %v662_v1, 0 }
  0xad   : > { %2121 = vmatprep.subr.mxu1 %v2692_v0  ;;  %2086 = vmatprep.subr.mxu0 %v2692_v0 }
  0xae   : > { %2122 = vmatpush3.msra.mxu1 %v762_v21  ;;  %2087 = vmatpush3.msra.mxu0 %v669_v22 }
  0xaf   : > { %2123 = vmatprep.subr.mxu1 %v2692_v0  ;;  %2088 = vmatprep.subr.mxu0 %v2692_v0 }
  0xb0   : > { %2124 = vmatpush3.msra.mxu1 %v761_v23  ;;  %2089 = vmatpush3.msra.mxu0 %v668_v24 }
  0xb1   : > { %2125 = vmatprep.subr.mxu1 %v2692_v0  ;;  %2090 = vmatprep.subr.mxu0 %v2692_v0 }
  0xb2   : > { %2126 = vmatpush3.msra.mxu1 %v760_v25  ;;  %2091 = vmatpush3.msra.mxu0 %v667_v26 }
  0xb3   : > { %2127 = vmatprep.subr.mxu1 %v2692_v0  ;;  %2092 = vmatprep.subr.mxu0 %v2692_v0 }
  0xb4   : > { %2128 = vmatpush3.msra.mxu1 %v759_v27  ;;  %2093 = vmatpush3.msra.mxu0 %v666_v28 }
  0xb5   : > { %2129 = vmatprep.subr.mxu1 %v2692_v0  ;;  %2094 = vmatprep.subr.mxu0 %v2692_v0 }
  0xb6   : > { %2130 = vmatpush3.msra.mxu1 %v758_v29  ;;  %2095 = vmatpush3.msra.mxu0 %v665_v30 }
  0xb7   : > { %2131 = vmatprep.subr.mxu1 %v2692_v0  ;;  %2096 = vmatprep.subr.mxu0 %v2692_v0 }
  0xb8   : > { %2132 = vmatpush3.msra.mxu1 %v757_v31  ;;  %2097 = vmatpush3.msra.mxu0 %v664_v33 }
  0xb9   : > { %2134 = vmatmul.mubr.f32.vlgmr.msra.gmra.mxu1 %v659_v32  ;;  %2099 = vmatmul.mubr.f32.vlgmr.msra.gmra.mxu0 %v3029_v34 }
  0xba   : > { %2171 = vmatprep.subr.bf16.mxu1 %v2692_v0  ;;  %2173 = vmatprep.mubr.msk.bf16.mxu1 %vm2693_vm0, %v2692_v0 }
  0xbb   : > { %2136 = vmatprep.subr.mxu0 %v2692_v0  ;;  %2168 = vmatprep.mubr.msk.f32.mxu0 %vm2693_vm0, %v2692_v0 }
  0xbc   : > { %2137 = vmatpush3.msra.mxu0 %v865_v46 }
  0xbd   : > { %2138 = vmatprep.subr.mxu0 %v2692_v0 }
  0xbe   : > { %2139 = vmatpush3.msra.mxu0 %v864_v47 }
  0xbf   : > { %2140 = vmatprep.subr.mxu0 %v2692_v0 }
  0xc0   : > { %2141 = vmatpush3.msra.mxu0 %v863_v48 }
  0xc1   : > { %2142 = vmatprep.subr.mxu0 %v2692_v0 }
  0xc2   : > { %2143 = vmatpush3.msra.mxu0 %v862_v49  ;;  %v953_v49 = vld [vmem:[#allocation13 + $0x38] sm:$0xff] }
  0xc3   : > { %2144 = vmatprep.subr.mxu0 %v2692_v0 }
  0xc4   : > { %2145 = vmatpush3.msra.mxu0 %v861_v50  ;;  %v952_v50 = vld [vmem:[#allocation13 + $0x30] sm:$0xff] }
  0xc5   : > { %2146 = vmatprep.subr.mxu0 %v2692_v0 }
  0xc6   : > { %2147 = vmatpush3.msra.mxu0 %v860_v51  ;;  %v950_v51 = vld [vmem:[#allocation13 + $0x20] sm:$0xff] }
  0xc7   : > { %2148 = vmatprep.subr.mxu0 %v2692_v0 }
  0xc8   : > { %2149 = vmatpush3.msra.mxu0 %v859_v52 }
  0xc9   : > { %2150 = vmatprep.subr.mxu0 %v2692_v0 }
  0xca   : > { %2151 = vmatpush3.msra.mxu0 %v858_v53 }
  0xcb   : > { %2152 = vmatprep.subr.mxu0 %v2692_v0 }
  0xcc   : > { %2153 = vmatpush3.msra.mxu0 %v857_v54 }
  0xcd   : > { %2154 = vmatprep.subr.mxu0 %v2692_v0 }
  0xce   : > { %2155 = vmatpush3.msra.mxu0 %v856_v55  ;;  %v949_v55 = vld [vmem:[#allocation13 + $0x18] sm:$0xff] }
  0xcf   : > { %2156 = vmatprep.subr.mxu0 %v2692_v0 }
  0xd0   : > { %2157 = vmatpush3.msra.mxu0 %v855_v56  ;;  %v948_v56 = vld [vmem:[#allocation13 + $0x10] sm:$0xff] }
  0xd1   : > { %2158 = vmatprep.subr.mxu0 %v2692_v0 }
  0xd2   : > { %2159 = vmatpush3.msra.mxu0 %v854_v57  ;;  %v947_v57 = vld [vmem:[#allocation13 + $0x8] sm:$0xff] }
  0xd3   : > { %2160 = vmatprep.subr.mxu0 %v2692_v0 }
  0xd4   : > { %2161 = vmatpush3.msra.mxu0 %v853_v58  ;;  %v946_v58 = vld [vmem:[#allocation13] sm:$0xff] }
  0xd5   : > { %2162 = vmatprep.subr.mxu0 %v2692_v0 }
  0xd6   : > { %2163 = vmatpush3.msra.mxu0 %v852_v59 }
  0xd7   : > { %2164 = vmatprep.subr.mxu0 %v2692_v0 }
  0xd8   : > { %2165 = vmatpush3.msra.mxu0 %v851_v60 }
  0xd9   : > { %2166 = vmatprep.subr.mxu0 %v2692_v0 }
  0xda   : > { %2167 = vmatpush3.msra.mxu0 %v850_v61 }
  0xdb   : > { %2169 = vmatmul.mubr.f32.vlgmr.msra.gmra.mxu0 %v660_v62  ;;  %2195 = vmatprep.subr.mxu0 %v2692_v0 }
  0xdc   : > { %2203 = vmatprep.mubr.msk.f32.mxu0 %vm2693_vm0, %v2692_v0  ;;  %2196 = vmatpush3.msra.mxu0 %v953_v49 }
  0xdd   : > { %2197 = vmatprep.subr.mxu0 %v2692_v0 }
  0xde   : > { %2198 = vmatpush3.msra.mxu0 %v952_v50 }
  0xdf   : > { %2199 = vmatprep.subr.mxu0 %v2692_v0 }
 0x179   : > { %v846_v37 = vpop.f32.mrf.mxu1  ;;  %v753_v39 = vpop.f32.mrf.mxu0 }
 0x17a   : > { %v847_v38 = vadd.f32 %v1958_v35, %v846_v37  ;;  %v754_v41 = vadd.f32 %v1957_v36, %v753_v39 }
 0x17b   : > { %v2135_v40 = vpop.f32.mrf.mxu1  ;;  %v2100_v43 = vpop.f32.mrf.mxu0 }
 0x17c   : > { %v3045_v42 = vpack.c.bf16 %v847_v38, %v847_v38  ;;  %v3049_v44 = vpack.c.bf16 %v754_v41, %v754_v41 }
 0x17e   : > { %1075 = vrot.lane.b32.xlu1 %v3045_v42, %s2694_s4  ;;  %v967_v45 = vsel %vm962_vm1, %v3045_v42, 0 }
 0x17f   : > { %2172 = vmatpush3.bf16.xpose.msra.mxu1 %v967_v45 }
 0x180   : > { %2177 = vmatprep.subr.bf16.mxu1 %v2692_v0 }
 0x182   : > { %1072 = vrot.lane.b32.xlu1 %v3049_v44, %s2694_s4 }
 0x186   : > { %2174 = vmatmul.mubr.msk.bf16.vlgmr.msra.gmra.mxu1 %vm962_vm1, %v3049_v44 }
 0x187   : > { %2179 = vmatprep.mubr.msk.bf16.mxu1 %vm2693_vm0, %v2692_v0 }
 0x19b   : > { %v939_v16 = vpop.f32.mrf.mxu0 }
 0x19c   : > { %v940_v17 = vadd.f32 %v1959_v15, %v939_v16 }
 0x19d   : > { %v2170_v18 = vpop.f32.mrf.mxu0 }
 0x19e   : > { %v3096_v19 = vpack.c.bf16 %v940_v17, %v940_v17 }
 0x1a0   : > { %v1029_v20 = vsel %vm1027_vm4, %v3096_v19, 0 }
 0x1a1   : > { %2178 = vmatpush3.bf16.msra.mxu1 %v1029_v20 }
 0x1a2   : > { %2183 = vmatprep.subr.bf16.mxu1 %v2692_v0 }
 0x1f0   : > { %v1076_v24 = vpop.permute.xlu1 %1075 }
 0x1f1   : > { %v1081_v26 = vsel %vm962_vm1, %v1076_v24, 0 }
 0x1f4   : > { %v1073_v27 = vpop.permute.xlu1 %1072 }
 0x246   : > { %v1003_v2 = vpop.f32.mrf.mxu1 }
 0x247   : > { %v1009_v4 = vmul.f32 0.17677669, %v1003_v2 }
 0x248   : > { %v2175_v5 = vpop.f32.mrf.mxu1 }
 0x249   : > { %v1010_v6 = vsel %vm3085_vm2, -1e+30, %v1009_v4 }
 0x24a   : > { %v1006_v7 = vpop.f32.mrf.mxu1  ;;  %v1012_v8 = vsel %vm1011_vm3, %v1010_v6, -inf }
 0x24b   : > { %1013 = vmax.xlane.f32.xlu0 %v1012_v8 }
 0x24c   : > { %v2176_v9 = vpop.f32.mrf.mxu1 }
 0x2d4   : > { %v1014_v10 = vpop.xlane.xlu0 %1013 }
 0x2d5   : > { %v1015_v11 = vsub.f32 %v1010_v6, %v1014_v10 }
 0x2d7   : > { %v1016_v12 = vmul.f32 1.442695, %v1015_v11 }
 0x2d9   : > { %2383 = vpow2.f32 %v1016_v12 }
 0x2e6   : > { %v2384_v13 = vpop.eup %2383 }
 0x2e7   : > { %v1018_v14 = vsel %vm1011_vm3, %v2384_v13, 0.0 }
 0x2e8   : > { %1019 = vadd.xlane.f32.xlu0 %v1018_v14 }
 0x371   : > { %v1020_v21 = vpop.xlane.xlu0 %1019 }
 0x372   : > { %2385 = vrcp.f32 %v1020_v21 }
 0x37f   : > { %v2386_v22 = vpop.eup %2385 }
 0x380   : > { %v1022_v23 = vmul.f32 %v2386_v22, %v2384_v13 }
 0x382   : > { %v1023_v25 = vpack.c.bf16 %v1022_v23, %v1022_v23 }
 0x384   : > { %2180 = vmatmul.mubr.msk.bf16.vlgmr.msra.gmra.mxu1 %vm1011_vm3, %v1023_v25 }
 0x385   : > { %2184 = vmatpush3.bf16.xpose.msra.mxu1 %v1081_v26  ;;  %2185 = vmatprep.mubr.msk.bf16.mxu1 %vm2693_vm0, %v2692_v0 }
 0x386   : > { %2189 = vmatprep.subr.bf16.mxu1 %v2692_v0 }
 0x38c   : > { %2186 = vmatmul.mubr.msk.bf16.vlgmr.msra.gmra.mxu1 %vm962_vm1, %v1073_v27 }
 0x38d   : > { %2191 = vmatprep.mubr.msk.bf16.mxu1 %vm2693_vm0, %v2692_v0 }
 0x444   : > { %v1065_v28 = vpop.f32.mrf.mxu1 }
 0x446   : > { %v2181_v29 = vpop.f32.mrf.mxu1 }
 0x448   : > { %v1068_v30 = vpop.f32.mrf.mxu1 }
 0x44a   : > { %v2182_v31 = vpop.f32.mrf.mxu1 }
 0x44c   : > { %v1117_v32 = vpop.f32.mrf.mxu1 }
 0x44d   : > { %v1123_v33 = vmul.f32 0.17677669, %v1117_v32 }
 0x44e   : > { %v2187_v35 = vpop.f32.mrf.mxu1 }
 0x44f   : > { %v1124_v36 = vsel %vm3085_vm2, -1e+30, %v1123_v33 }
 0x450   : > { %v1120_v37 = vpop.f32.mrf.mxu1  ;;  %v1125_v38 = vsel %vm1011_vm3, %v1124_v36, -inf }
 0x451   : > { %1126 = vmax.xlane.f32.xlu0 %v1125_v38 }
 0x452   : > { %v2188_v39 = vpop.f32.mrf.mxu1 }
 0x467   : > { %1138 = vrot.lane.b32.xlu0 %v3096_v19, %s2694_s4  ;;  %s3316_s4 = sld [smem:[#allocation34_spill]] }
 0x46b   : > { %1334 = vrot.lane.b32.xlu0 %v3045_v42, %s2695_s25 }
 0x46f   : > { %1332 = vrot.lane.b32.xlu0 %v3049_v44, %s2695_s25 }
 0x473   : > { %1520 = vrot.lane.b32.xlu0 %v3045_v42, %s2696_s22  ;;  %v951_v42 = vld [vmem:[#allocation13 + $0x28] sm:$0xff] }
 0x474   : > { %2200 = vmatpush3.msra.mxu0 %v951_v42 }
 0x475   : > { %2201 = vmatprep.subr.mxu0 %v2692_v0 }
 0x476   : > { %2202 = vmatpush3.msra.mxu0 %v950_v51 }
 0x477   : > { %2217 = vmatprep.subr.bf16.mxu0 %v2692_v0 }
 0x4da   : > { %v1127_v40 = vpop.xlane.xlu0 %1126 }
 0x4db   : > { %v1128_v41 = vsub.f32 %v1124_v36, %v1127_v40 }
 0x4dd   : > { %v1129_v43 = vmul.f32 1.442695, %v1128_v41 }
 0x4de   : > { %v1139_v45 = vpop.permute.xlu0 %1138 }
 0x4df   : > { %2387 = vpow2.f32 %v1129_v43  ;;  %v1144_v46 = vsel %vm1027_vm4, %v1139_v45, 0  ;;  %v957_v43 = vld [vmem:[#allocation13 + $0x58] sm:$0xff]  ;;  %v955_v45 = vld [vmem:[#allocation13 + $0x48] sm:$0xff] }
 0x4e0   : > { %2190 = vmatpush3.bf16.msra.mxu1 %v1144_v46  ;;  %v954_v46 = vld [vmem:[#allocation13 + $0x40] sm:$0xff] }
 0x4e1   : > { %2206 = vmatprep.subr.mxu1 %v2692_v0 }
 0x4e2   : > { %v1335_v59 = vpop.permute.xlu0 %1334 }
 0x4e3   : > { %v1340_v62 = vsel %vm962_vm1, %v1335_v59, 0 }
 0x4e6   : > { %v1333_v60 = vpop.permute.xlu0 %1332 }
 0x4ea   : > { %v1521_v2 = vpop.permute.xlu0 %1520 }
 0x4eb   : > { %v1526_v6 = vsel %vm962_vm1, %v1521_v2, 0 }
 0x4ec   : > { %v2388_v47 = vpop.eup %2387 }
 0x4ed   : > { %v1131_v48 = vsel %vm1011_vm3, %v2388_v47, 0.0 }
 0x4ee   : > { %1132 = vadd.xlane.f32.xlu1 %v1131_v48  ;;  %v960_v48 = vld [vmem:[#allocation13 + $0x70] sm:$0xff] }
 0x4ff   : > { %1518 = vrot.lane.b32.xlu1 %v3049_v44, %s2696_s22 }
 0x577   : > { %v1133_v52 = vpop.xlane.xlu1 %1132 }
 0x578   : > { %2389 = vrcp.f32 %v1133_v52 }
 0x57b   : > { %v1519_v8 = vpop.permute.xlu1 %1518 }
 0x585   : > { %v2390_v53 = vpop.eup %2389 }
 0x586   : > { %v1135_v44 = vmul.f32 %v2390_v53, %v2388_v47  ;;  %v961_v47 = vld [vmem:[#allocation13 + $0x78] sm:$0xff] }
 0x588   : > { %v1136_v54 = vpack.c.bf16 %v1135_v44, %v1135_v44 }
 0x58a   : > { %2192 = vmatmul.mubr.msk.bf16.vlgmr.msra.gmra.mxu1 %vm1011_vm3, %v1136_v54 }
 0x58b   : > { %2207 = vmatpush3.msra.mxu1 %v949_v55  ;;  %2214 = vmatprep.mubr.msk.f32.mxu1 %vm2693_vm0, %v2692_v0 }
 0x58c   : > { %2208 = vmatprep.subr.mxu1 %v2692_v0 }
 0x58d   : > { %2209 = vmatpush3.msra.mxu1 %v948_v56 }
 0x58e   : > { %2210 = vmatprep.subr.mxu1 %v2692_v0 }
 0x58f   : > { %2211 = vmatpush3.msra.mxu1 %v947_v57  ;;  %v959_v57 = vld [vmem:[#allocation13 + $0x68] sm:$0xff] }
 0x590   : > { %2212 = vmatprep.subr.mxu1 %v2692_v0 }
 0x591   : > { %2213 = vmatpush3.msra.mxu1 %v946_v58  ;;  %v958_v58 = vld [vmem:[#allocation13 + $0x60] sm:$0xff] }
 0x592   : > { %2215 = vmatmul.mubr.msk.f32.vlgmr.msra.gmra.mxu1 %vm962_vm1, %v1065_v28  ;;  %2223 = vmatprep.subr.bf16.mxu1 %v2692_v0 }
 0x593   : > { %2225 = vmatprep.mubr.msk.bf16.mxu1 %vm2693_vm0, %v2692_v0 }
 0x64a   : > { %v1180_v61 = vpop.f32.mrf.mxu1 }
 0x64b   : > { %2204 = vmatmul.mubr.msk.f32.vlgmr.msra.gmra.mxu0 %vm962_vm1, %v1180_v61 }
 0x64c   : > { %2218 = vmatpush3.bf16.xpose.msra.mxu0 %v1340_v62  ;;  %v2193_v63 = vpop.f32.mrf.mxu1  ;;  %2219 = vmatprep.mubr.msk.bf16.mxu0 %vm2693_vm0, %v2692_v0 }
 0x64d   : > { %2240 = vmatprep.subr.bf16.mxu0 %v2692_v0 }
 0x64e   : > { %v1183_v1 = vpop.f32.mrf.mxu1 }
 0x650   : > { %v2194_v4 = vpop.f32.mrf.mxu1 }
 0x652   : > { %v3144_v5 = vpop.f32.mrf.mxu1 }
 0x653   : > { %2220 = vmatmul.mubr.msk.bf16.vlgmr.msra.gmra.mxu0 %vm962_vm1, %v1333_v60 }
 0x654   : > { %2241 = vmatpush3.bf16.xpose.msra.mxu0 %v1526_v6  ;;  %v2216_v7 = vpop.f32.mrf.mxu1  ;;  %2242 = vmatprep.mubr.msk.bf16.mxu0 %vm2693_vm0, %v2692_v0 }
 0x655   : > { %2252 = vmatprep.subr.mxu0 %v2692_v0  ;;  %v1972_v7 = vld [vmem:[%s3313_s8] ss:$0 sm:$0xff] }
 0x65b   : > { %2243 = vmatmul.mubr.msk.bf16.vlgmr.msra.gmra.mxu0 %vm962_vm1, %v1519_v8 }
 0x65c   : > { %2260 = vmatprep.mubr.msk.f32.mxu0 %vm2693_vm0, %v2692_v0  ;;  %2253 = vmatpush3.msra.mxu0 %v961_v47 }
 0x65d   : > { %2254 = vmatprep.subr.mxu0 %v2692_v0 }
 0x65e   : > { %2255 = vmatpush3.msra.mxu0 %v960_v48 }
 0x65f   : > { %2256 = vmatprep.subr.mxu0 %v2692_v0 }
 0x660   : > { %2257 = vmatpush3.msra.mxu0 %v959_v57 }
 0x661   : > { %2258 = vmatprep.subr.mxu0 %v2692_v0 }
 0x662   : > { %2259 = vmatpush3.msra.mxu0 %v958_v58 }
 0x70b   : > { %v3154_v9 = vpop.f32.mrf.mxu0 }
 0x70c   : > { %v1329_v59 = vadd.f32 %v3144_v5, %v3154_v9 }
 0x70d   : > { %v2205_v10 = vpop.f32.mrf.mxu0 }
 0x713   : > { %v1376_v11 = vpop.f32.mrf.mxu0 }
 0x714   : > { %v1382_v12 = vmul.f32 0.17677669, %v1376_v11 }
 0x715   : > { %v2221_v13 = vpop.f32.mrf.mxu0 }
 0x716   : > { %v1383_v14 = vsel %vm3085_vm2, -1e+30, %v1382_v12 }
 0x717   : > { %v1379_v15 = vpop.f32.mrf.mxu0  ;;  %v1384_v16 = vsel %vm1011_vm3, %v1383_v14, -inf }
 0x718   : > { %1385 = vmax.xlane.f32.xlu0 %v1384_v16 }
 0x719   : > { %v2222_v17 = vpop.f32.mrf.mxu0 }
 0x71b   : > { %v1562_v18 = vpop.f32.mrf.mxu0 }
 0x71c   : > { %v1568_v28 = vmul.f32 0.17677669, %v1562_v18  ;;  %v1973_v18 = vld [vmem:[%s3315_s24] ss:$0 sm:$0xff] }
 0x71d   : > { %v2244_v20 = vpop.f32.mrf.mxu0 }
 0x71e   : > { %v1569_v31 = vsel %vm3085_vm2, -1e+30, %v1568_v28 }
 0x71f   : > { %v1565_v21 = vpop.f32.mrf.mxu0  ;;  %v1570_v32 = vsel %vm1011_vm3, %v1569_v31, -inf }
 0x721   : > { %v2245_v22 = vpop.f32.mrf.mxu0 }
 0x72e   : > { %1396 = vrot.lane.b32.xlu0 %v3096_v19, %s2695_s25  ;;  %s1743_s25 = scalar_lea.sflag [#allocation4], %s2964_s14 }
 0x7a1   : > { %v1386_v23 = vpop.xlane.xlu0 %1385 }
 0x7a2   : > { %v1387_v24 = vsub.f32 %v1383_v14, %v1386_v23 }
 0x7a4   : > { %v1388_v25 = vmul.f32 1.442695, %v1387_v24 }
 0x7a5   : > { %v1397_v26 = vpop.permute.xlu0 %1396 }
 0x7a6   : > { %2391 = vpow2.f32 %v1388_v25  ;;  %v1402_v27 = vsel %vm1027_vm4, %v1397_v26, 0 }
 0x7a7   : > { %2224 = vmatpush3.bf16.msra.mxu1 %v1402_v27 }
 0x7a8   : > { %2229 = vmatprep.subr.mxu1 %v2692_v0 }
 0x7b3   : > { %v2392_v29 = vpop.eup %2391 }
 0x7b4   : > { %v1390_v30 = vsel %vm1011_vm3, %v2392_v29, 0.0 }
 0x7b5   : > { %1391 = vadd.xlane.f32.xlu1 %v1390_v30 }
 0x7b9   : > { %1571 = vmax.xlane.f32.xlu1 %v1570_v32 }
 0x7ca   : > { %1582 = vrot.lane.b32.xlu1 %v3096_v19, %s2696_s22  ;;  %v956_v19 = vld [vmem:[#allocation13 + $0x50] sm:$0xff]  ;;  %s2589_s22 = scalar_lea.vmem %s1758_s13, 128 }
 0x7cb   : > { %p2590_p12 = scmp.ne.s32.totalorder %s1758_s13, %s2589_s22  ;;  %p2597_p7 = scmp.lt.s32.totalorder %s2595_s16, %s2589_s22 }
 0x7cd   : > { %p2591_p5 = pnand %p2590_p12, %p3319_p2  ;;  %p2598_p4 = por %p2597_p7, %p2596_p1 }
 0x7cf   : > { %p2592_p10 = pneg %p2591_p5 }
 0x7d1   : > { %p2599_p8 = pnand %p2598_p4, %p2592_p10 }
 0x83e   : > { %v1392_v33 = vpop.xlane.xlu1 %1391 }
 0x83f   : > { %2393 = vrcp.f32 %v1392_v33 }
 0x842   : > { %v1572_v35 = vpop.xlane.xlu1 %1571 }
 0x843   : > { %v1573_v36 = vsub.f32 %v1569_v31, %v1572_v35 }
 0x845   : > { %v1574_v37 = vmul.f32 1.442695, %v1573_v36 }
 0x846   : > { %v1583_v42 = vpop.permute.xlu1 %1582 }
 0x847   : > { %2395 = vpow2.f32 %v1574_v37  ;;  %v1588_v53 = vsel %vm1027_vm4, %v1583_v42, 0 }
 0x84c   : > { %v2394_v38 = vpop.eup %2393 }
 0x84d   : > { %v1394_v39 = vmul.f32 %v2394_v38, %v2392_v29 }
 0x84f   : > { %v1395_v40 = vpack.c.bf16 %v1394_v39, %v1394_v39 }
 0x851   : > { %2226 = vmatmul.mubr.msk.bf16.vlgmr.msra.gmra.mxu1 %vm1011_vm3, %v1395_v40 }
 0x852   : > { %2237 = vmatprep.mubr.msk.f32.mxu1 %vm2693_vm0, %v2692_v0  ;;  %2230 = vmatpush3.msra.mxu1 %v957_v43 }
 0x853   : > { %2231 = vmatprep.subr.mxu1 %v2692_v0 }
 0x854   : > { %v2396_v3 = vpop.eup %2395  ;;  %2232 = vmatpush3.msra.mxu1 %v956_v19 }
 0x855   : > { %v1576_v41 = vsel %vm1011_vm3, %v2396_v3, 0.0  ;;  %2233 = vmatprep.subr.mxu1 %v2692_v0 }
 0x856   : > { %1577 = vadd.xlane.f32.xlu0 %v1576_v41  ;;  %2234 = vmatpush3.msra.mxu1 %v955_v45 }
 0x857   : > { %2235 = vmatprep.subr.mxu1 %v2692_v0 }
 0x858   : > { %2236 = vmatpush3.msra.mxu1 %v954_v46 }
 0x859   : > { %2246 = vmatprep.subr.bf16.mxu1 %v2692_v0 }
 0x8df   : > { %v1578_v49 = vpop.xlane.xlu0 %1577 }
 0x8e0   : > { %2397 = vrcp.f32 %v1578_v49 }
 0x8ed   : > { %v2398_v50 = vpop.eup %2397 }
 0x8ee   : > { %v1580_v51 = vmul.f32 %v2398_v50, %v2396_v3 }
 0x8f0   : > { %v1581_v54 = vpack.c.bf16 %v1580_v51, %v1580_v51 }
 0x911   : > { %v1438_v52 = vpop.f32.mrf.mxu1 }
 0x912   : > { %2238 = vmatmul.mubr.msk.f32.vlgmr.msra.gmra.mxu1 %vm962_vm1, %v1438_v52 }
 0x913   : > { %2247 = vmatpush3.bf16.msra.mxu1 %v1588_v53  ;;  %v2227_v44 = vpop.f32.mrf.mxu1  ;;  %2248 = vmatprep.mubr.msk.bf16.mxu1 %vm2693_vm0, %v2692_v0 }
 0x915   : > { %v1441_v55 = vpop.f32.mrf.mxu1 }
 0x916   : > { %2249 = vmatmul.mubr.msk.bf16.vlgmr.msra.gmra.mxu1 %vm1011_vm3, %v1581_v54 }
 0x917   : > { %v2228_v56 = vpop.f32.mrf.mxu1 }
 0x9d2   : > { %v1513_v60 = vpop.f32.mrf.mxu1 }
 0x9d3   : > { %v1517_v61 = vadd.f32 %v1513_v60, %v1329_v59 }
 0x9d4   : > { %v2239_v62 = vpop.f32.mrf.mxu1 }
 0x9d6   : > { %v1624_v63 = vpop.f32.mrf.mxu1 }
 0x9d7   : > { %2261 = vmatmul.mubr.msk.f32.vlgmr.msra.gmra.mxu0 %vm962_vm1, %v1624_v63 }
 0x9d8   : > { %v2250_v1 = vpop.f32.mrf.mxu1 }
 0x9da   : > { %v1627_v2 = vpop.f32.mrf.mxu1 }
 0x9dc   : > { %v2251_v4 = vpop.f32.mrf.mxu1 }
 0xa97   : > { %v1699_v6 = vpop.f32.mrf.mxu0 }
 0xa98   : > { %v1703_v8 = vadd.f32 %v1699_v6, %v1517_v61 }
 0xa99   : > { %v2262_v0 = vpop.f32.mrf.mxu0 }
 0xa9a   : > { %v1711_v10 = vadd.f32 %v1972_v7, %v1703_v8 }
 0xa9c   : > { %v1712_v5 = vadd.f32 %v1711_v10, %v3029_v34  ;;  %v1974_v34 = vld [vmem:[%s3316_s4] ss:$0 sm:$0xff] }
 0xa9e   : > { %1713 = vadd.xlane.f32.xlu1 %v1712_v5 }
 0xb27   : > { %v1714_v9 = vpop.xlane.xlu1 %1713 }
 0xb28   : > { %v1716_v11 = vmul.f32 0.0078125, %v1714_v9 }
 0xb2a   : > { %v1717_v12 = vsub.f32 %v1712_v5, %v1716_v11 }
 0xb2c   : > { %v1718_v13 = vmul.f32 %v1717_v12, %v1717_v12 }
 0xb2e   : > { %1719 = vadd.xlane.f32.xlu0 %v1718_v13 }
 0xbb7   : > { %v1720_v14 = vpop.xlane.xlu0 %1719 }
 0xbb8   : > { %v1721_v15 = vmul.f32 0.0078125, %v1720_v14 }
 0xbba   : > { %v1722_v16 = vadd.f32 1e-05, %v1721_v15 }
 0xbbc   : > { %2399 = vrsqrt.f32 %v1722_v16 }
 0xbc9   : > { %v2400_v17 = vpop.eup %2399 }
 0xbca   : > { %v1724_v20 = vmul.f32 %v2400_v17, %v1717_v12 }
 0xbcc   : > { %v1732_v21 = vmul.f32 %v1973_v18, %v1724_v20 }
 0xbce   : > { %v1740_v22 = vadd.f32 %v1974_v34, %v1732_v21 }
 0xbd0   : > { %1741 = vst [vmem:[%s649_s11] sm:$0xff] %v1740_v22 }
 0xbd1   : > { %2602 = shalt.err (!%p2599_p8)
}
 0xbd2   : > { %s2603_s28 = scalar_lea.hbm %s1755_s9, 128  ;;  %s2607_s20 = scalar_lea.hbm %s3318_s23, 256 }
 0xbd3   : > { %p2604_p6 = scmp.ne.s32.totalorder %s1755_s9, %s2603_s28  ;;  %p2608_p13 = scmp.lt.s32.totalorder %s1755_s9, %s3318_s23 }
 0xbd4   : > { %p2609_p9 = scmp.lt.s32.totalorder %s2607_s20, %s2603_s28 }
 0xbd5   : > { %p2605_p3 = pnand %p2604_p6, %p3319_p2 }
 0xbd6   : > { %p2610_p11 = por %p2609_p9, %p2608_p13 }
 0xbd7   : > { %p2606_p0 = pneg %p2605_p3 }
 0xbd9   : > { %p2611_p12 = pnand %p2610_p11, %p2606_p0 }
 0xbdb   : > { %2614 = shalt.err (!%p2611_p12)
}
 0xbdc   : > { %2285 = dma.vmem_to_hbm [thread:$0]  (%p3319_p2), %s1758_s13, 128, %s1755_s9, %s1743_s25  }
 0xbdd PF: > { %s3320_s1 = sld [smem:[#allocation20_spill]] }
 0xbde   : > { %s3321_s21 = sld [smem:[#allocation26_spill]] }
 0xbdf   : > { %s3322_s4 = sld [smem:[#allocation22_spill]] }
 0xbe3   : > { %s1769_s17 = sand.u32 1, %s3320_s1  }
 0xbe4   : > { %p3323_p5 = scmp.ne.s32.totalorder %s3321_s21, 0  ;;  %s1770_s11 = scalar_lea.sflag [#allocation4], %s1769_s17 }
 0xbe5   : > { %p3324_p10 = scmp.ge.s32.totalorder %s3322_s4, 2 }
 0xbe7   : > { %p2311_p1 = pnand %p3324_p10, %p3323_p5 }
 0xbe9   : > { %p2312_p7 = pneg %p2311_p1 }
 0xbeb   : > { %2656 = dma.done.wait (%p2312_p7), %s1770_s11, 128  }
 0xbec   : > { %2658 = vsyncadd (%p2312_p7), %s1770_s11, 4294967168  ;;  %s35_s18 = sadd.s32 1, %s3322_s4   ;;  %s3325_s27 = sld [smem:[#allocation25_spill]] }
 0xbed   : > { %p32_p4 = scmp.ge.s32.totalorder %s35_s18, 4   ;;  %s3326_s16 = sld [smem:[#allocation21_spill]] }
 0xbee   : > { %s3327_s17 = sld [smem:[#allocation23_spill]]  ;;  %s3328_s29 = smov %s2665_s30 }
 0xbef   : > { %s3329_s30 = smov %s2669_s15  ;;  %34 = sbr.rel (!%p32_p4) target bundleno = 20 (0x14), region = 164 }
 0xbf2   : > { %s3330_s15 = smov %s3325_s27 }
 0xbf4   :  { %1775 = vsyncpa [#allocation3], 1 }
 0xbf5   :  { %1777 = vsyncpa [#allocation3 + $0x1], 1 }
 0xbf6   :  { %1778 = vsyncpa [#allocation6], 1 }
 0xbf7   :  { %1780 = vsyncpa [#allocation6 + $0x1], 1 }
 0xbf8   :  { %1781 = vsyncpa [#allocation9], 1 }
 0xbf9   :  { %1782 = vsyncpa [#allocation12], 1 }
 0xbfa   :  { %1783 = vsyncpa [#allocation4], 1 }
 0xbfb   :  { %1785 = vsyncpa [#allocation4 + $0x1], 1 }

</bundles_post_ra>
